<compile_context>
chip_gen: v6e
topology: v6e:2x2x1
jax: 0.10.0
libtpu: 0.0.40
codegen_flags: <defaults>
</compile_context>

<pallas_src>
import functools
import math

import jax
import jax.numpy as jnp
from jax import lax
from jax.experimental import pallas as pl
from jax.experimental.pallas import tpu as pltpu


_NEG_INF = -1e30  # additive value masking padded kv columns / query rows


def _flash_attn_kernel(q_ref, k_ref, v_ref, mask_ref, o_ref,
                       m_scr, l_scr, acc_scr):
    kv_idx = pl.program_id(2)

    @pl.when(kv_idx == 0)
    def _init():
        m_scr[...] = jnp.full_like(m_scr, -jnp.inf)
        l_scr[...] = jnp.zeros_like(l_scr)
        acc_scr[...] = jnp.zeros_like(acc_scr)

    q = q_ref[0]                  # (Tq, D) bf16, pre-scaled by 1/sqrt(D)
    k = k_ref[0]                  # (Tk, D) bf16
    v = v_ref[0]                  # (Tk, D) bf16
    mask = mask_ref[0]            # (Tq, Tk) bf16 additive

    # s = q @ k^T : contract last dims of both operands (no XLU transpose).
    s = lax.dot_general(
        q, k,
        dimension_numbers=(((1,), (1,)), ((), ())),
        preferred_element_type=jnp.float32)
    s = s + mask.astype(jnp.float32)

    # Online (streaming) softmax update, all f32 (safe on v5e too).
    # TODO(synk): on v6e/v7x a bf16 exp (or exp2 with log2(e) folded into the
    # scale) roughly doubles EUP throughput if the exp slot saturates.
    m_prev = m_scr[...]                                        # (Tq, 1)
    m_new = jnp.maximum(m_prev, jnp.max(s, axis=-1, keepdims=True))
    alpha = jnp.exp(m_prev - m_new)
    p = jnp.exp(s - m_new)                                     # (Tq, Tk) f32

    l_scr[...] = alpha * l_scr[...] + jnp.sum(p, axis=-1, keepdims=True)
    acc_scr[...] = alpha * acc_scr[...] + lax.dot_general(
        p.astype(jnp.bfloat16), v,
        dimension_numbers=(((1,), (0,)), ((), ())),
        preferred_element_type=jnp.float32)
    m_scr[...] = m_new

    @pl.when(kv_idx == pl.num_programs(2) - 1)
    def _finalize():
        inv_l = pl.reciprocal(l_scr[...], approx=True)   # EUP slot (~1e-3 rel)
        o_ref[0] = (acc_scr[...] * inv_l).astype(o_ref.dtype)


def _round_up(x, m):
    return (x + m - 1) // m * m


def masked_attention(query, key, value, mask, *, block_q=512, block_k=512):
    """softmax(q @ k^T / sqrt(D) + mask) @ v.

    query/key/value: (B, S, D) float32; mask: (1, S, S) additive float32.
    """
    B, S, D = query.shape
    assert key.shape == (B, S, D) and value.shape == (B, S, D)
    assert mask.shape == (1, S, S)
    out_dtype = query.dtype
    scale = 1.0 / math.sqrt(D)

    # Tile sizes: 128-lane multiples (lane-dense score/mask tiles), clamped
    # to the (padded) sequence length.
    bq = _round_up(min(block_q, _round_up(S, 128)), 128)
    bk = _round_up(min(block_k, _round_up(S, 128)), 128)
    sq = _round_up(S, bq)    # padded number of query rows
    sk = _round_up(S, bk)    # padded number of kv rows

    # Cast streams to bf16 in the wrapper; fold the 1/sqrt(D) scale into q so
    # the kernel does no per-kv-step scaling / casting.
    q_bf = (query * scale).astype(jnp.bfloat16)
    k_bf = key.astype(jnp.bfloat16)
    v_bf = value.astype(jnp.bfloat16)
    mask_bf = mask.astype(jnp.bfloat16)

    if sq != S:
        q_bf = jnp.pad(q_bf, ((0, 0), (0, sq - S), (0, 0)))
    if sk != S:
        k_bf = jnp.pad(k_bf, ((0, 0), (0, sk - S), (0, 0)))
        v_bf = jnp.pad(v_bf, ((0, 0), (0, sk - S), (0, 0)))
    if sq != S or sk != S:
        # Padded kv columns are masked out; padded query rows are sliced away.
        mask_bf = jnp.pad(mask_bf, ((0, 0), (0, sq - S), (0, sk - S)),
                          constant_values=_NEG_INF)

    grid = (B, sq // bq, sk // bk)

    q_spec = pl.BlockSpec((1, bq, D), lambda b, qi, ki: (b, qi, 0))
    kv_spec = pl.BlockSpec((1, bk, D), lambda b, qi, ki: (b, ki, 0))
    mask_spec = pl.BlockSpec((1, bq, bk), lambda b, qi, ki: (0, qi, ki))
    out_spec = pl.BlockSpec((1, bq, D), lambda b, qi, ki: (b, qi, 0))

    # Truthful byte counts: q/out once, K/V once per q-block, mask once per
    # batch (its index_map ignores b while b is the outermost grid axis).
    bytes_accessed = (
        B * sq * D * 2                          # q (bf16), read once
        + 2 * (sq // bq) * B * sk * D * 2       # k and v, once per q-block
        + B * sq * sk * 2                       # mask, once per batch
        + B * sq * D * 4)                       # output (f32)
    cost = pl.CostEstimate(
        flops=4 * B * sq * sk * D,              # QK^T and P@V
        transcendentals=B * sq * sk,            # exp
        bytes_accessed=bytes_accessed)

    out = pl.pallas_call(
        _flash_attn_kernel,
        out_shape=jax.ShapeDtypeStruct((B, sq, D), out_dtype),
        grid_spec=pltpu.PrefetchScalarGridSpec(
            num_scalar_prefetch=0,
            grid=grid,
            in_specs=[q_spec, kv_spec, kv_spec, mask_spec],
            out_specs=out_spec,
            scratch_shapes=[
                pltpu.VMEM((bq, 1), jnp.float32),   # running max  m
                pltpu.VMEM((bq, 1), jnp.float32),   # running sum  l
                pltpu.VMEM((bq, D), jnp.float32),   # output accumulator
            ]),
        compiler_params=pltpu.CompilerParams(
            dimension_semantics=("parallel", "parallel", "arbitrary"),
            vmem_limit_bytes=16 * 1024 * 1024),     # true WS is a few MiB
        cost_estimate=cost,
    )(q_bf, k_bf, v_bf, mask_bf)

    if sq != S:
        out = out[:, :S, :]
    return out


if __name__ == "__main__":
    def reference(q, k, v, mask):
        d = q.shape[-1]
        s = jnp.einsum("bsd,btd->bst", q, k) / math.sqrt(d) + mask
        w = jax.nn.softmax(s, axis=-1)
        return jnp.einsum("bst,btd->bsd", w, v)

    root = jax.random.PRNGKey(0)

    # Case 1: shapes implied by the module (mask is (1, 56, 56)); head_dim 128.
    B, S, D = 2, 56, 128
    kq, kk, kv, km = jax.random.split(jax.random.fold_in(root, 0), 4)
    q = jax.random.normal(kq, (B, S, D), dtype=jnp.float32)
    k = jax.random.normal(kk, (B, S, D), dtype=jnp.float32)
    v = jax.random.normal(kv, (B, S, D), dtype=jnp.float32)
    mask = jnp.where(jax.random.uniform(km, (1, S, S)) > 0.7,
                     -1e9, 0.0).astype(jnp.float32)

    out = masked_attention(q, k, v, mask)
    jax.block_until_ready(out)
    ref = reference(q, k, v, mask)
    assert out.shape == ref.shape
    # bf16 matmul inputs + approx reciprocal -> relaxed (but tight) tolerance.
    assert jnp.allclose(out, ref, atol=2e-2, rtol=2e-2), (
        f"mismatch (case 1): max abs diff {jnp.max(jnp.abs(out - ref))}")

    # Case 2: exercises the multi-tile online-softmax path and seq padding.
    B, S, D = 2, 320, 128
    kq, kk, kv, km = jax.random.split(jax.random.fold_in(root, 1), 4)
    q = jax.random.normal(kq, (B, S, D), dtype=jnp.float32)
    k = jax.random.normal(kk, (B, S, D), dtype=jnp.float32)
    v = jax.random.normal(kv, (B, S, D), dtype=jnp.float32)
    mask = jnp.where(jax.random.uniform(km, (1, S, S)) > 0.7,
                     -1e9, 0.0).astype(jnp.float32)

    out2 = masked_attention(q, k, v, mask, block_q=128, block_k=128)
    jax.block_until_ready(out2)
    ref2 = reference(q, k, v, mask)
    assert jnp.allclose(out2, ref2, atol=2e-2, rtol=2e-2), (
        f"mismatch (case 2): max abs diff {jnp.max(jnp.abs(out2 - ref2))}")

    # Case 3: same data, default (large) tiles -> single kv step per q-block.
    out3 = masked_attention(q, k, v, mask)
    jax.block_until_ready(out3)
    assert jnp.allclose(out3, ref2, atol=2e-2, rtol=2e-2), (
        f"mismatch (case 3): max abs diff {jnp.max(jnp.abs(out3 - ref2))}")

    print("KERNEL_OK")
</pallas_src>

<mosaic_0001>
module attributes {stable_mosaic.version = 11 : i64} {
  func.func @_flash_attn_kernel(%arg0: i32, %arg1: i32, %arg2: i32, %arg3: memref<1x128x128xbf16, #tpu.memory_space<vmem>>, %arg4: memref<1x128x128xbf16, #tpu.memory_space<vmem>>, %arg5: memref<1x128x128xbf16, #tpu.memory_space<vmem>>, %arg6: memref<1x128x128xbf16, #tpu.memory_space<vmem>>, %arg7: memref<1x128x128xf32, #tpu.memory_space<vmem>>, %arg8: memref<128x1xf32, #tpu.memory_space<vmem>>, %arg9: memref<128x1xf32, #tpu.memory_space<vmem>>, %arg10: memref<128x128xf32, #tpu.memory_space<vmem>>) attributes {dimension_semantics = [#tpu.dimension_semantics<parallel>, #tpu.dimension_semantics<parallel>, #tpu.dimension_semantics<arbitrary>], iteration_bounds = array<i64: 2, 1, 1>, scalar_prefetch = 0 : i64, scratch_operands = 3 : i64, tpu.core_type = #tpu.core_type<tc>, window_params = [{transform_indices = @transform_0, window_bounds = array<i64: 1, 128, 128>}, {transform_indices = @transform_1, window_bounds = array<i64: 1, 128, 128>}, {transform_indices = @transform_2, window_bounds = array<i64: 1, 128, 128>}, {transform_indices = @transform_3, window_bounds = array<i64: 1, 128, 128>}, {transform_indices = @transform_4, window_bounds = array<i64: 1, 128, 128>}]} {
    %c0_i32 = arith.constant 0 : i32
    %0 = arith.cmpi eq, %arg2, %c0_i32 : i32
    %1 = arith.extui %0 : i1 to i32
    %c0_i32_0 = arith.constant 0 : i32
    %2 = arith.cmpi ne, %1, %c0_i32_0 : i32
    scf.if %2 {
      %cst_29 = arith.constant 0xFF800000 : f32
      %40 = vector.broadcast %cst_29 : f32 to vector<128x1xf32>
      %c0_30 = arith.constant 0 : index
      %c0_31 = arith.constant 0 : index
      %41 = vector.load %arg8[%c0_30, %c0_31] : memref<128x1xf32, #tpu.memory_space<vmem>>, vector<128x1xf32>
      tpu.vector_store %arg8[%c0_30, %c0_31], %40 {strides = array<i32>} : memref<128x1xf32, #tpu.memory_space<vmem>>, vector<128x1xf32>,
      %cst_32 = arith.constant 0.000000e+00 : f32
      %42 = vector.broadcast %cst_32 : f32 to vector<128x1xf32>
      %c0_33 = arith.constant 0 : index
      %c0_34 = arith.constant 0 : index
      %43 = vector.load %arg9[%c0_33, %c0_34] : memref<128x1xf32, #tpu.memory_space<vmem>>, vector<128x1xf32>
      tpu.vector_store %arg9[%c0_33, %c0_34], %42 {strides = array<i32>} : memref<128x1xf32, #tpu.memory_space<vmem>>, vector<128x1xf32>,
      %cst_35 = arith.constant 0.000000e+00 : f32
      %44 = vector.broadcast %cst_35 : f32 to vector<128x128xf32>
      %c0_36 = arith.constant 0 : index
      %c0_37 = arith.constant 0 : index
      %45 = vector.load %arg10[%c0_36, %c0_37] : memref<128x128xf32, #tpu.memory_space<vmem>>, vector<128x128xf32>
      tpu.vector_store %arg10[%c0_36, %c0_37], %44 {strides = array<i32>} : memref<128x128xf32, #tpu.memory_space<vmem>>, vector<128x128xf32>,
    } else {
    }
    %c0 = arith.constant 0 : index
    %c0_1 = arith.constant 0 : index
    %c0_2 = arith.constant 0 : index
    %3 = vector.load %arg3[%c0, %c0_1, %c0_2] : memref<1x128x128xbf16, #tpu.memory_space<vmem>>, vector<1x128x128xbf16>
    %4 = vector.shape_cast %3 : vector<1x128x128xbf16> to vector<128x128xbf16>
    %c0_3 = arith.constant 0 : index
    %c0_4 = arith.constant 0 : index
    %c0_5 = arith.constant 0 : index
    %5 = vector.load %arg4[%c0_3, %c0_4, %c0_5] : memref<1x128x128xbf16, #tpu.memory_space<vmem>>, vector<1x128x128xbf16>
    %6 = vector.shape_cast %5 : vector<1x128x128xbf16> to vector<128x128xbf16>
    %c0_6 = arith.constant 0 : index
    %c0_7 = arith.constant 0 : index
    %c0_8 = arith.constant 0 : index
    %7 = vector.load %arg5[%c0_6, %c0_7, %c0_8] : memref<1x128x128xbf16, #tpu.memory_space<vmem>>, vector<1x128x128xbf16>
    %8 = vector.shape_cast %7 : vector<1x128x128xbf16> to vector<128x128xbf16>
    %c0_9 = arith.constant 0 : index
    %c0_10 = arith.constant 0 : index
    %c0_11 = arith.constant 0 : index
    %9 = vector.load %arg6[%c0_9, %c0_10, %c0_11] : memref<1x128x128xbf16, #tpu.memory_space<vmem>>, vector<1x128x128xbf16>
    %10 = vector.shape_cast %9 : vector<1x128x128xbf16> to vector<128x128xbf16>
    %cst = arith.constant dense<0.000000e+00> : vector<128x128xf32>
    %11 = tpu.matmul %4, %6, %cst {dimension_numbers = #tpu.dot_dimension_numbers<[1], [1], [0], [0], [0, 0, 1, 0], [], []>} : vector<128x128xbf16>, vector<128x128xbf16>, vector<128x128xf32> -> vector<128x128xf32>
    %12 = arith.extf %10 : vector<128x128xbf16> to vector<128x128xf32>
    %13 = arith.addf %11, %12 : vector<128x128xf32>
    %c0_12 = arith.constant 0 : index
    %c0_13 = arith.constant 0 : index
    %14 = vector.load %arg8[%c0_12, %c0_13] : memref<128x1xf32, #tpu.memory_space<vmem>>, vector<128x1xf32>
    %cst_14 = arith.constant dense<0xFF800000> : vector<128xf32>
    %15 = vector.multi_reduction <maximumf>, %13, %cst_14 [1] : vector<128x128xf32> to vector<128xf32>
    %16 = vector.shape_cast %15 : vector<128xf32> to vector<128x1xf32>
    %17 = arith.maximumf %14, %16 : vector<128x1xf32>
    %18 = arith.subf %14, %17 : vector<128x1xf32>
    %19 = math.exp %18 : vector<128x1xf32>
    %20 = vector.broadcast %17 : vector<128x1xf32> to vector<128x128xf32>
    %21 = arith.subf %13, %20 : vector<128x128xf32>
    %22 = math.exp %21 : vector<128x128xf32>
    %c0_15 = arith.constant 0 : index
    %c0_16 = arith.constant 0 : index
    %23 = vector.load %arg9[%c0_15, %c0_16] : memref<128x1xf32, #tpu.memory_space<vmem>>, vector<128x1xf32>
    %24 = arith.mulf %19, %23 : vector<128x1xf32>
    %cst_17 = arith.constant dense<0.000000e+00> : vector<128xf32>
    %25 = vector.multi_reduction <add>, %22, %cst_17 [1] : vector<128x128xf32> to vector<128xf32>
    %26 = vector.shape_cast %25 : vector<128xf32> to vector<128x1xf32>
    %27 = arith.addf %24, %26 : vector<128x1xf32>
    %c0_18 = arith.constant 0 : index
    %c0_19 = arith.constant 0 : index
    %28 = vector.load %arg9[%c0_18, %c0_19] : memref<128x1xf32, #tpu.memory_space<vmem>>, vector<128x1xf32>
    tpu.vector_store %arg9[%c0_18, %c0_19], %27 {strides = array<i32>} : memref<128x1xf32, #tpu.memory_space<vmem>>, vector<128x1xf32>,
    %c0_20 = arith.constant 0 : index
    %c0_21 = arith.constant 0 : index
    %29 = vector.load %arg10[%c0_20, %c0_21] : memref<128x128xf32, #tpu.memory_space<vmem>>, vector<128x128xf32>
    %30 = vector.broadcast %19 : vector<128x1xf32> to vector<128x128xf32>
    %31 = arith.mulf %30, %29 : vector<128x128xf32>
    %32 = arith.truncf %22 : vector<128x128xf32> to vector<128x128xbf16>
    %cst_22 = arith.constant dense<0.000000e+00> : vector<128x128xf32>
    %33 = tpu.matmul %32, %8, %cst_22 {dimension_numbers = #tpu.dot_dimension_numbers<[1], [0], [0], [1], [0, 0, 1, 1], [], []>} : vector<128x128xbf16>, vector<128x128xbf16>, vector<128x128xf32> -> vector<128x128xf32>
    %34 = arith.addf %31, %33 : vector<128x128xf32>
    %c0_23 = arith.constant 0 : index
    %c0_24 = arith.constant 0 : index
    %35 = vector.load %arg10[%c0_23, %c0_24] : memref<128x128xf32, #tpu.memory_space<vmem>>, vector<128x128xf32>
    tpu.vector_store %arg10[%c0_23, %c0_24], %34 {strides = array<i32>} : memref<128x128xf32, #tpu.memory_space<vmem>>, vector<128x128xf32>,
    %c0_25 = arith.constant 0 : index
    %c0_26 = arith.constant 0 : index
    %36 = vector.load %arg8[%c0_25, %c0_26] : memref<128x1xf32, #tpu.memory_space<vmem>>, vector<128x1xf32>
    tpu.vector_store %arg8[%c0_25, %c0_26], %17 {strides = array<i32>} : memref<128x1xf32, #tpu.memory_space<vmem>>, vector<128x1xf32>,
    %c0_i32_27 = arith.constant 0 : i32
    %37 = arith.cmpi eq, %arg2, %c0_i32_27 : i32
    %38 = arith.extui %37 : i1 to i32
    %c0_i32_28 = arith.constant 0 : i32
    %39 = arith.cmpi ne, %38, %c0_i32_28 : i32
    scf.if %39 {
      %c0_29 = arith.constant 0 : index
      %c0_30 = arith.constant 0 : index
      %40 = vector.load %arg9[%c0_29, %c0_30] : memref<128x1xf32, #tpu.memory_space<vmem>>, vector<128x1xf32>
      %41 = tpu.reciprocal %40 {approx = true} : vector<128x1xf32> -> vector<128x1xf32>
      %c0_31 = arith.constant 0 : index
      %c0_32 = arith.constant 0 : index
      %42 = vector.load %arg10[%c0_31, %c0_32] : memref<128x128xf32, #tpu.memory_space<vmem>>, vector<128x128xf32>
      %43 = vector.broadcast %41 : vector<128x1xf32> to vector<128x128xf32>
      %44 = arith.mulf %42, %43 : vector<128x128xf32>
      %c0_33 = arith.constant 0 : index
      %c0_34 = arith.constant 0 : index
      %c0_35 = arith.constant 0 : index
      %45 = vector.load %arg7[%c0_33, %c0_34, %c0_35] : memref<1x128x128xf32, #tpu.memory_space<vmem>>, vector<1x128x128xf32>
      %46 = vector.shape_cast %45 : vector<1x128x128xf32> to vector<128x128xf32>
      %47 = vector.shape_cast %44 : vector<128x128xf32> to vector<1x128x128xf32>
      tpu.vector_store %arg7[%c0_33, %c0_34, %c0_35], %47 {strides = array<i32>} : memref<1x128x128xf32, #tpu.memory_space<vmem>>, vector<1x128x128xf32>,
    } else {
    }
    return
  }
  func.func @transform_0(%arg0: i32, %arg1: i32, %arg2: i32) -> (i32, i32, i32) {
    %c0_i32 = arith.constant 0 : i32
    %c0_i32_0 = arith.constant 0 : i32
    return %arg0, %arg1, %c0_i32 : i32, i32, i32
  }
  func.func @transform_1(%arg0: i32, %arg1: i32, %arg2: i32) -> (i32, i32, i32) {
    %c0_i32 = arith.constant 0 : i32
    %c0_i32_0 = arith.constant 0 : i32
    return %arg0, %arg2, %c0_i32 : i32, i32, i32
  }
  func.func @transform_2(%arg0: i32, %arg1: i32, %arg2: i32) -> (i32, i32, i32) {
    %c0_i32 = arith.constant 0 : i32
    %c0_i32_0 = arith.constant 0 : i32
    return %arg0, %arg2, %c0_i32 : i32, i32, i32
  }
  func.func @transform_3(%arg0: i32, %arg1: i32, %arg2: i32) -> (i32, i32, i32) {
    %c0_i32 = arith.constant 0 : i32
    %c0_i32_0 = arith.constant 0 : i32
    return %c0_i32, %arg1, %arg2 : i32, i32, i32
  }
  func.func @transform_4(%arg0: i32, %arg1: i32, %arg2: i32) -> (i32, i32, i32) {
    %c0_i32 = arith.constant 0 : i32
    %c0_i32_0 = arith.constant 0 : i32
    return %arg0, %arg1, %c0_i32 : i32, i32, i32
  }
}

</mosaic_0001>

<bundles_post_ra>
// kernel: tpu_custom_call.1
= control target key start
LH: loop header
LB: loop body
LE: loop exit
PB: predicated region body
PF: predicated region fallthrough
CT: control target
= control target key end

     0   :  { %s2962_s0 = inlined_call_operand.hbm [shape: bf16[2,128,128], index: 0, kind: input, shape index: {}]   ;;  %s2963_s1 = inlined_call_operand.hbm [shape: bf16[2,128,128], index: 1, kind: input, shape index: {}]   ;;  %s2964_s2 = inlined_call_operand.hbm [shape: bf16[2,128,128], index: 2, kind: input, shape index: {}]   ;;  %s2965_s3 = inlined_call_operand.hbm [shape: bf16[1,128,128], index: 3, kind: input, shape index: {}]   ;;  %s2966_s4 = inlined_call_operand.hbm [shape: f32[2,128,128], index: 4, kind: output, shape index: {}]  }
   0x1   :  { %2975 = sst [smem:[#allocation20_spill]] %s2962_s0 }
   0x2   :  { %2976 = sst [smem:[#allocation21_spill]] %s2963_s1 }
   0x3   :  { %9 = vsyncpa [#allocation6], 0 }
   0x4   :  { %11 = vsyncpa [#allocation6 + $0x1], 0 }
   0x5   :  { %12 = vsyncpa [#allocation9], 0 }
   0x6   :  { %14 = vsyncpa [#allocation9 + $0x1], 0 }
   0x7   :  { %15 = vsyncpa [#allocation12], 0 }
   0x8   :  { %16 = vsyncpa [#allocation7], 0 }
   0x9   :  { %18 = vsyncpa [#allocation7 + $0x1], 0  ;;  %s2303_s15 = smov 0   ;;  %s2305_s16 = smov 0  }
   0xa   :  { %s2307_s17 = smov 0   ;;  %s2309_s18 = smov 0  }
   0xb   :  { %s2311_s19 = smov 0   ;;  %s2313_s20 = smov 0  }
   0xc LB: > { %2977 = sst [smem:[#allocation18_spill]] %s2260_s19  ;;  %s43_s21 = sadd.s32 1, %s2260_s19  ;;  %s2264_s20 = sphi %s2313_s20, %s24_s20   ;;  %s2260_s19 = sphi %s2311_s19, %s3009_s19   ;;  %s2256_s18 = sphi %s2309_s18, %s3008_s18   ;;  %s2252_s17 = sphi %s2307_s17, %s3012_s17   ;;  %s2248_s16 = sphi %s2305_s16, %s3011_s16   ;;  %s2244_s15 = sphi %s2303_s15, %s3010_s15  }
   0xd   : > { %s52_s22 = sadd.s32 1, %s2252_s17  ;;  %p45_p0 = scmp.ge.s32.totalorder %s43_s21, 2 }
   0xe   : > { %p59_p1 = scmp.ne.s32.totalorder %s2252_s17, %s2248_s16  ;;  %p60_p2 = scmp.eq.s32.totalorder %s2264_s20, 0 }
   0xf   : > { %s3014_s21 = smov (%p45_p0, %s43_s21), 0  ;;  %p1885_p6 = scmp.lt.s32.totalorder %s2264_s20, 2 }
  0x10   : > { %2978 = sst [smem:[#allocation19_spill]] %s3014_s21  ;;  %p61_p3 = por %p60_p2, %p59_p1 }
  0x11   : > { %s47_s23 = ssub.s32 %s2260_s19, %s3014_s21  ;;  %s218_s24 = sand.u32 1, %s2252_s17  }
  0x12   : > { %p50_p5 = scmp.eq.s32.totalorder %s47_s23, 0  ;;  %s2349_s25 = sshll.u32 %s2260_s19, 10 }
  0x13   : > { %s2356_s27 = sshll.u32 %s218_s24, 6  ;;  %p2358_p7 = pnand %p1885_p6, %p61_p3 }
  0x14   : > { %s2352_s26 = scalar_select %p50_p5, %s2252_s17, %s52_s22  }
  0x15   : > { %s241_s29 = sand.u32 1, %s2264_s20   ;;  %s2980_s1 = sld [smem:[#allocation21_spill]] }
  0x16   : > { %s245_s7 = scalar_lea.vmem [#allocation8], %s2356_s27  ;;  %s2368_s9 = scalar_lea.sflag [#allocation9], %s241_s29 }
  0x17   : > { %s254_s8 = sshll.u32 %s245_s7, 4  ;;  %p2974_p8 = pneg %p2358_p7  ;;  %s255_s8 = int_to_ptr.vmem [resolvable:$true] %s254_s8 }
  0x18   : > { %s2079_s10 = scalar_lea.vmem %s255_s8, 1024  ;;  %s2266_s11 = smov [#allocation8]  }
  0x19   : > { %p2080_p9 = scmp.ne.s32.totalorder %s255_s8, %s2079_s10  ;;  %s2084_s12 = sshll.u32 %s2266_s11, 4  ;;  %s2085_s12 = int_to_ptr.vmem [resolvable:$false] %s2084_s12 }
  0x1a   : > { %s2086_s13 = scalar_lea.vmem %s2085_s12, 2048  ;;  %p2087_p12 = scmp.lt.s32.totalorder %s255_s8, %s2085_s12 }
  0x1b   : > { %s253_s6 = scalar_lea.hbm %s2980_s1, %s2349_s25  ;;  %p2082_p10 = pnand %p2080_p9, %p2974_p8 }
  0x1c   : > { %p2088_p13 = scmp.lt.s32.totalorder %s2086_s13, %s2079_s10 }
  0x1d   : > { %p2083_p11 = pneg %p2082_p10 }
  0x1e   : > { %p2089_p0 = por %p2088_p13, %p2087_p12 }
  0x20   : > { %p2090_p2 = pnand %p2089_p0, %p2083_p11 }
  0x22   : > { %2093 = shalt.err (!%p2090_p2)
}
  0x23   : > { %s2967_s14 = smov 64   ;;  %s2969_s22 = smov 4  }
  0x24   : > { %1876 = dma.hbm_to_vmem [thread:$0]  (!%p2358_p7), %s253_s6, 1024, %s255_s8, %s2368_s9, %s2967_s14, %s2967_s14, %s2969_s22  }
  0x25   : > { %s2382_s23 = sadd.s32 4294967295, %s2264_s20   ;;  %s1667_s29 = sadd.s32 4294967294, %s2264_s20  }
  0x26   : > { %p65_p3 = scmp.ne.s32.totalorder %s2248_s16, %s2244_s15  ;;  %p2973_p5 = scmp.eq.s32.totalorder %s2382_s23, 0 }
  0x27   : > { %p175_p6 = scmp.eq.s32.totalorder %s2382_s23, 1  ;;  %p181_p9 = scmp.eq.s32.totalorder %s1667_s29, 1 }
  0x28   : > { %p1668_p10 = scmp.ge.s32.totalorder %s2264_s20, 1  ;;  %p2392_p11 = por %p2973_p5, %p65_p3 }
  0x29   : > { %p2399_p12 = por %p175_p6, %p59_p1  ;;  %p2403_p13 = por %p181_p9, %p65_p3 }
  0x2a   : > { %p188_p0 = scmp.lt.s32.totalorder %s2264_s20, 3  ;;  %s2269_s8 = smov [#allocation11]  }
  0x2b   : > { %s2983_s6 = scalar_select %p2403_p13, 1, 0 }
  0x2c   : > { %p2408_p2 = pnand %p1668_p10, %p188_p0  ;;  %s204_s10 = sshll.u32 %s2269_s8, 4  ;;  %s2412_s10 = int_to_ptr.vmem [resolvable:$true] %s204_s10 }
  0x2d   : > { %s2985_s0 = sld [smem:[#allocation20_spill]]  ;;  %s222_s29 = scalar_lea.vmem [#allocation5], %s2356_s27 }
  0x2e   : > { %p1866_p1 = pneg %p2408_p2  ;;  %s231_s14 = sshll.u32 %s222_s29, 4  ;;  %s232_s14 = int_to_ptr.vmem [resolvable:$true] %s231_s14 }
  0x2f   : > { %s219_s1 = scalar_lea.sflag [#allocation6], %s218_s24  ;;  %s2107_s21 = scalar_lea.vmem %s232_s14, 1024 }
  0x30   : > { %p2423_p3 = pnand %p1866_p1, %p2973_p5  ;;  %p2108_p6 = scmp.ne.s32.totalorder %s232_s14, %s2107_s21 }
  0x31   : > { %s2270_s8 = smov [#allocation5]  }
  0x32   : > { %p2110_p9 = pnand %p2108_p6, %p2974_p8  ;;  %s2112_s19 = sshll.u32 %s2270_s8, 4  ;;  %s2113_s19 = int_to_ptr.vmem [resolvable:$false] %s2112_s19 }
  0x33   : > { %s230_s13 = scalar_lea.hbm %s2985_s0, %s2349_s25  ;;  %s2114_s11 = scalar_lea.vmem %s2113_s19, 2048 }
  0x34   : > { %p2111_p10 = pneg %p2110_p9  ;;  %p2115_p0 = scmp.lt.s32.totalorder %s232_s14, %s2113_s19 }
  0x35   : > { %p2116_p4 = scmp.lt.s32.totalorder %s2114_s11, %s2107_s21 }
  0x37   : > { %p2117_p13 = por %p2116_p4, %p2115_p0 }
  0x39   : > { %p2118_p1 = pnand %p2117_p13, %p2111_p10 }
  0x3b   : > { %2121 = shalt.err (!%p2118_p1)
}
  0x3c   : > { %s2987_s12 = smov 4   ;;  %s2988_s29 = smov 64  }
  0x3d   : > { %1873 = dma.hbm_to_vmem [thread:$0]  (!%p2358_p7), %s230_s13, 1024, %s232_s14, %s219_s1, %s2988_s29, %s2988_s29, %s2987_s12  }
  0x3e   : > { %p2124_p6 = pneg %p2423_p3  ;;  %s2133_s24 = scalar_lea.vmem %s2412_s10, 1024 }
  0x3f   : > { %p2134_p9 = scmp.ne.s32.totalorder %s2412_s10, %s2133_s24  ;;  %p2141_p4 = scmp.lt.s32.totalorder %s2412_s10, %s2412_s10 }
  0x40   : > { %p2142_p13 = scmp.lt.s32.totalorder %s2133_s24, %s2133_s24 }
  0x41   : > { %p2136_p5 = pnand %p2134_p9, %p2124_p6 }
  0x42   : > { %p2143_p10 = por %p2142_p13, %p2141_p4 }
  0x43   : > { %p2137_p8 = pneg %p2136_p5 }
  0x45   : > { %p2144_p0 = pnand %p2143_p10, %p2137_p8 }
  0x47   : > { %2147 = shalt.err (!%p2144_p0)
}
  0x48   : > { %1869 = dma.hbm_to_vmem [thread:$0]  (!%p2423_p3), %s2965_s3, 1024, %s2412_s10, [#allocation12], %s2988_s29, %s2988_s29, %s2987_s12  }
  0x49   : > { %s276_s13 = scalar_lea.hbm %s2964_s2, %s2349_s25  ;;  %s268_s8 = scalar_lea.vmem [#allocation10], %s2356_s27 }
  0x4a   : > { %s277_s11 = sshll.u32 %s268_s8, 4  ;;  %p2989_p5 = pneg %p2358_p7  ;;  %s278_s11 = int_to_ptr.vmem [resolvable:$true] %s277_s11 }
  0x4b   : > { %s2161_s24 = scalar_lea.vmem %s278_s11, 1024  ;;  %s2271_s22 = smov [#allocation10]  }
  0x4c   : > { %p2162_p8 = scmp.ne.s32.totalorder %s278_s11, %s2161_s24  ;;  %s2166_s0 = sshll.u32 %s2271_s22, 4  ;;  %s2167_s0 = int_to_ptr.vmem [resolvable:$false] %s2166_s0 }
  0x4d   : > { %s2168_s19 = scalar_lea.vmem %s2167_s0, 2048  ;;  %p2169_p9 = scmp.lt.s32.totalorder %s278_s11, %s2167_s0 }
  0x4e   : > { %p2164_p1 = pnand %p2162_p8, %p2989_p5  ;;  %p2170_p4 = scmp.lt.s32.totalorder %s2168_s19, %s2161_s24 }
  0x50   : > { %p2165_p6 = pneg %p2164_p1  ;;  %p2171_p3 = por %p2170_p4, %p2169_p9 }
  0x52   : > { %p2172_p13 = pnand %p2171_p3, %p2165_p6 }
  0x54   : > { %2175 = shalt.err (!%p2172_p13)
}
  0x55   : > { %1879 = dma.hbm_to_vmem [thread:$0]  (!%p2358_p7), %s276_s13, 1024, %s278_s11, %s2368_s9, %s2988_s29, %s2988_s29, %s2987_s12  }
  0x56   : > { %289 = sbr.rel (%p2408_p2) target bundleno = 992 (0x3e0), region = 36  ;;  %s2469_s25 = sand.u32 (!%p2408_p2), 1, %s2248_s16  }
  0x57   : > { %s1681_s0 = sshll.u32 (!%p2408_p2), %s2469_s25, 6  ;;  %s292_s27 = scalar_lea.sflag (!%p2408_p2), [#allocation6], %s2469_s25 }
  0x58   : > { %s2473_s10 = scalar_lea.vmem (!%p2408_p2), [#allocation5], %s1681_s0 }
  0x5b   : > { %2227 = dma.done.wait (%p2392_p11), %s292_s27, 1024  }
  0x5c   : > { %2229 = vsyncadd (%p2392_p11), %s292_s27, 4294966272  ;;  %s300_s28 = sand.u32 1, %s2382_s23   ;;  %s304_s7 = scalar_lea.vmem [#allocation8], %s1681_s0 }
  0x5d   : > { %s301_s9 = scalar_lea.sflag [#allocation9], %s300_s28 }
  0x5e   : > { %2231 = dma.done.wait (%p2392_p11), %s301_s9, 2048  }
  0x5f   : > { %2233 = vsyncadd (%p2392_p11), %s301_s9, 4294965248  ;;  %s2484_s12 = scalar_lea.vmem [#allocation10], %s1681_s0  ;;  %p2990_p7 = scmp.eq.s32.totalorder %s2382_s23, 0 }
  0x61   : > { %2235 = dma.done.wait (%p2990_p7), [#allocation12], 1024   ;;  %p2991_p2 = pmov %p2990_p7 }
  0x62   : > { %v1946_v0 = vld [vmem:[%s304_s7 + $0x38] sm:$0xff]   ;;  %v1947_v1 = vld [vmem:[%s304_s7 + $0x30] sm:$0xff]   ;;  %v1948_v2 = vld [vmem:[%s304_s7 + $0x28] sm:$0xff]   ;;  %vm362_vm0 = vcmask 7168   ;;  %v2272_v16 = vmov -inf   ;;  %v2273_v45 = vmov 0  }
  0x63   : > { %2237 = vsyncadd (%p2991_p2), [#allocation12], 4294966272  ;;  %1790 = vmatprep.subr.bf16.mxu0 %v1946_v0  ;;  %v1954_v3 = vld [vmem:[%s2473_s10] sm:$0xff]   ;;  %v1950_v5 = vld [vmem:[%s304_s7 + $0x18] sm:$0xff]   ;;  %365 = vst.msk [vmem:[#allocation2 + $0x10] sm:$0xff] %vm362_vm0, %v2272_v16  ;;  %1945 = vset.pattern.permute.xlu1 %v2273_v45  ;;  %s1685_s23 = sshll.u32 %s2469_s25, 7 }
  0x64   : > { %1791 = vmatpush3.bf16.xpose.msra.mxu0 %v1946_v0  ;;  %1806 = vmatprep.mubr.bf16.mxu0 %v1954_v3  ;;  %v1949_v4 = vld [vmem:[%s304_s7 + $0x20] sm:$0xff]   ;;  %v1951_v6 = vld [vmem:[%s304_s7 + $0x10] sm:$0xff]   ;;  %v1952_v7 = vld [vmem:[%s304_s7 + $0x8] sm:$0xff]   ;;  %363 = vst.msk [vmem:[#allocation2] sm:$0xff] %vm362_vm0, %v2272_v16  ;;  %s2883_s30 = scalar_lea.vmem [#allocation13], %s1685_s23  ;;  %s1718_s29 = sshll.u32 %s2256_s18, 11 }
  0x65   : > { %1792 = vmatprep.subr.bf16.mxu0 %v1947_v1  ;;  %v1953_v8 = vld [vmem:[%s304_s7] sm:$0xff]   ;;  %v1955_v9 = vld [vmem:[%s2473_s10 + $0x8] sm:$0xff]   ;;  %v1956_v10 = vld [vmem:[%s2473_s10 + $0x10] sm:$0xff]   ;;  %364 = vst.msk [vmem:[#allocation2 + $0x8] sm:$0xff] %vm362_vm0, %v2272_v16  ;;  %1944 = vset.pattern.permute.xlu0 %v2273_v45  ;;  %s1513_s1 = sshll.u32 %s2883_s30, 4  ;;  %s2911_s13 = scalar_lea.hbm %s2966_s4, %s1718_s29  ;;  %s2913_s1 = int_to_ptr.vmem [resolvable:$true] %s1513_s1 }
  0x66   : > { %v1957_v11 = vld [vmem:[%s2473_s10 + $0x18] sm:$0xff]   ;;  %v1958_v12 = vld [vmem:[%s2473_s10 + $0x20] sm:$0xff]   ;;  %v1959_v13 = vld [vmem:[%s2473_s10 + $0x28] sm:$0xff]   ;;  %366 = vst.msk [vmem:[#allocation2 + $0x18] sm:$0xff] %vm362_vm0, %v2272_v16  ;;  %s1498_s8 = scalar_lea.sflag [#allocation7], %s2469_s25  ;;  %s2176_s18 = scalar_lea.vmem %s2913_s1, 2048 }
  0x67   : > { %v1960_v14 = vld [vmem:[%s2473_s10 + $0x30] sm:$0xff]   ;;  %v1961_v15 = vld [vmem:[%s2473_s10 + $0x38] sm:$0xff]   ;;  %367 = vst.msk [vmem:[#allocation2 + $0x20] sm:$0xff] %vm362_vm0, %v2272_v16  ;;  %368 = vst.msk [vmem:[#allocation2 + $0x28] sm:$0xff] %vm362_vm0, %v2272_v16  ;;  %p2177_p11 = scmp.ne.s32.totalorder %s2913_s1, %s2176_s18  ;;  %s2275_s11 = smov [#allocation13]  }
  0x68   : > { %369 = vst.msk [vmem:[#allocation2 + $0x30] sm:$0xff] %vm362_vm0, %v2272_v16  ;;  %370 = vst.msk [vmem:[#allocation2 + $0x38] sm:$0xff] %vm362_vm0, %v2272_v16  ;;  %v1751_v17 = vld [vmem:[#allocation11 + $0x8] sm:$0xff]   ;;  %v1720_v18 = vld [vmem:[#allocation11] sm:$0xff]   ;;  %s2180_s24 = sshll.u32 %s2275_s11, 4  ;;  %s2181_s24 = int_to_ptr.vmem [resolvable:$false] %s2180_s24 }
  0x69   : > { %371 = vst.msk [vmem:[#allocation2 + $0x40] sm:$0xff] %vm362_vm0, %v2272_v16  ;;  %372 = vst.msk [vmem:[#allocation2 + $0x48] sm:$0xff] %vm362_vm0, %v2272_v16  ;;  %v1725_v19 = vunpack.c.l.bf16 %v1751_v17  ;;  %v1721_v20 = vunpack.c.l.bf16 %v1720_v18  ;;  %v1726_v23 = vunpack.c.h.bf16 %v1751_v17  ;;  %v1722_v26 = vunpack.c.h.bf16 %v1720_v18  ;;  %v1752_v28 = vld [vmem:[#allocation11 + $0x10] sm:$0xff]   ;;  %v1753_v33 = vld [vmem:[#allocation11 + $0x18] sm:$0xff]   ;;  %p2178_p10 = pnand %p2177_p11, %p2399_p12  ;;  %s2182_s22 = scalar_lea.vmem %s2181_s24, 4096 }
  0x6a   : > { %373 = vst.msk [vmem:[#allocation2 + $0x50] sm:$0xff] %vm362_vm0, %v2272_v16  ;;  %374 = vst.msk [vmem:[#allocation2 + $0x58] sm:$0xff] %vm362_vm0, %v2272_v16  ;;  %v1729_v32 = vunpack.c.l.bf16 %v1752_v28  ;;  %v1734_v35 = vunpack.c.h.bf16 %v1753_v33  ;;  %v1733_v37 = vunpack.c.l.bf16 %v1753_v33  ;;  %v1754_v40 = vld [vmem:[#allocation11 + $0x20] sm:$0xff]   ;;  %v1730_v42 = vunpack.c.h.bf16 %v1752_v28  ;;  %v1755_v44 = vld [vmem:[#allocation11 + $0x28] sm:$0xff]   ;;  %p2183_p8 = scmp.lt.s32.totalorder %s2913_s1, %s2181_s24  ;;  %p2184_p5 = scmp.lt.s32.totalorder %s2182_s22, %s2176_s18 }
  0x6b   : > { %375 = vst.msk [vmem:[#allocation2 + $0x60] sm:$0xff] %vm362_vm0, %v2272_v16  ;;  %376 = vst.msk [vmem:[#allocation2 + $0x68] sm:$0xff] %vm362_vm0, %v2272_v16  ;;  %v1737_v47 = vunpack.c.l.bf16 %v1754_v40  ;;  %v1741_v50 = vunpack.c.l.bf16 %v1755_v44  ;;  %v1742_v51 = vunpack.c.h.bf16 %v1755_v44  ;;  %v1756_v55 = vld [vmem:[#allocation11 + $0x30] sm:$0xff]   ;;  %v1738_v58 = vunpack.c.h.bf16 %v1754_v40  ;;  %v1757_v60 = vld [vmem:[#allocation11 + $0x38] sm:$0xff]   ;;  %p2179_p0 = pneg %p2178_p10 }
  0x6c   : > { %1793 = vmatpush3.bf16.xpose.msra.mxu0 %v1947_v1  ;;  %377 = vst.msk [vmem:[#allocation2 + $0x70] sm:$0xff] %vm362_vm0, %v2272_v16  ;;  %378 = vst.msk [vmem:[#allocation2 + $0x78] sm:$0xff] %vm362_vm0, %v2272_v16  ;;  %v1745_v61 = vunpack.c.l.bf16 %v1756_v55  ;;  %v1749_v0 = vunpack.c.l.bf16 %v1757_v60  ;;  %v1750_v1 = vunpack.c.h.bf16 %v1757_v60  ;;  %p2185_p1 = por %p2184_p5, %p2183_p8 }
  0x6d   : > { %1794 = vmatprep.subr.bf16.mxu0 %v1948_v2  ;;  %v2587_v18 = vld [vmem:[#allocation2 + $0x18] sm:$0xff] }
  0x6e   : > { %p2186_p6 = pnand %p2185_p1, %p2179_p0 }
  0x74   : > { %1795 = vmatpush3.bf16.xpose.msra.mxu0 %v1948_v2  ;;  %v2274_v2 = vmov 0.0  }
  0x75   : > { %1796 = vmatprep.subr.bf16.mxu0 %v1949_v4  ;;  %381 = vst.msk [vmem:[#allocation3 + $0x10] sm:$0xff] %vm362_vm0, %v2274_v2  ;;  %379 = vst.msk [vmem:[#allocation3] sm:$0xff] %vm362_vm0, %v2274_v2 }
  0x76   : > { %380 = vst.msk [vmem:[#allocation3 + $0x8] sm:$0xff] %vm362_vm0, %v2274_v2  ;;  %382 = vst.msk [vmem:[#allocation3 + $0x18] sm:$0xff] %vm362_vm0, %v2274_v2 }
  0x77   : > { %383 = vst.msk [vmem:[#allocation3 + $0x20] sm:$0xff] %vm362_vm0, %v2274_v2  ;;  %384 = vst.msk [vmem:[#allocation3 + $0x28] sm:$0xff] %vm362_vm0, %v2274_v2 }
  0x78   : > { %385 = vst.msk [vmem:[#allocation3 + $0x30] sm:$0xff] %vm362_vm0, %v2274_v2  ;;  %386 = vst.msk [vmem:[#allocation3 + $0x38] sm:$0xff] %vm362_vm0, %v2274_v2 }
  0x79   : > { %387 = vst.msk [vmem:[#allocation3 + $0x40] sm:$0xff] %vm362_vm0, %v2274_v2  ;;  %388 = vst.msk [vmem:[#allocation3 + $0x48] sm:$0xff] %vm362_vm0, %v2274_v2 }
  0x7a   : > { %389 = vst.msk [vmem:[#allocation3 + $0x50] sm:$0xff] %vm362_vm0, %v2274_v2  ;;  %390 = vst.msk [vmem:[#allocation3 + $0x58] sm:$0xff] %vm362_vm0, %v2274_v2 }
  0x7b   : > { %391 = vst.msk [vmem:[#allocation3 + $0x60] sm:$0xff] %vm362_vm0, %v2274_v2  ;;  %392 = vst.msk [vmem:[#allocation3 + $0x68] sm:$0xff] %vm362_vm0, %v2274_v2 }
  0x7c   : > { %1797 = vmatpush3.bf16.xpose.msra.mxu0 %v1949_v4  ;;  %393 = vst.msk [vmem:[#allocation3 + $0x70] sm:$0xff] %vm362_vm0, %v2274_v2  ;;  %394 = vst.msk [vmem:[#allocation3 + $0x78] sm:$0xff] %vm362_vm0, %v2274_v2 }
  0x7d   : > { %1798 = vmatprep.subr.bf16.mxu0 %v1950_v5 }
  0x84   : > { %1799 = vmatpush3.bf16.xpose.msra.mxu0 %v1950_v5 }
  0x85   : > { %1800 = vmatprep.subr.bf16.mxu0 %v1951_v6 }
  0x8c   : > { %1801 = vmatpush3.bf16.xpose.msra.mxu0 %v1951_v6 }
  0x8d   : > { %1802 = vmatprep.subr.bf16.mxu0 %v1952_v7 }
  0x94   : > { %1803 = vmatpush3.bf16.xpose.msra.mxu0 %v1952_v7 }
  0x95   : > { %1804 = vmatprep.subr.bf16.mxu0 %v1953_v8 }
  0x9c   : > { %1805 = vmatpush3.bf16.xpose.msra.mxu0 %v1953_v8  ;;  %v1746_v8 = vunpack.c.h.bf16 %v1756_v55  ;;  %v2649_v55 = vld [vmem:[#allocation2 + $0x40] sm:$0xff] }
  0xa3   : > { %1807 = vmatmul.mubr.bf16.vlgmr.msra.gmra.mxu0 %v1955_v9 }
  0xa4   : > { %1810 = vmatprep.mubr.bf16.mxu0 %v1956_v10 }
  0xab   : > { %1811 = vmatmul.mubr.bf16.gmra.mxu0 %v1957_v11  ;;  %v1962_v11 = vld [vmem:[%s2484_s12 + $0x38] sm:$0xff]  }
  0xac   : > { %1814 = vmatprep.mubr.bf16.mxu0 %v1958_v12  ;;  %1822 = vmatprep.subr.bf16.mxu1 %v1962_v11  ;;  %v2579_v12 = vld [vmem:[#allocation2 + $0x10] sm:$0xff] }
  0xad   : > { %1823 = vmatpush3.bf16.msra.mxu1 %v1962_v11  ;;  %v2679_v11 = vld [vmem:[#allocation2 + $0x48] sm:$0xff] }
  0xb3   : > { %1815 = vmatmul.mubr.bf16.gmra.mxu0 %v1959_v13  ;;  %v1963_v13 = vld [vmem:[%s2484_s12 + $0x30] sm:$0xff]  }
  0xb4   : > { %1818 = vmatprep.mubr.bf16.mxu0 %v1960_v14  ;;  %1824 = vmatprep.subr.bf16.mxu1 %v1963_v13 }
  0xb5   : > { %1825 = vmatpush3.bf16.msra.mxu1 %v1963_v13  ;;  %v1969_v13 = vld [vmem:[%s2484_s12] sm:$0xff]  }
  0xbb   : > { %1819 = vmatmul.mubr.bf16.gmra.mxu0 %v1961_v15  ;;  %v2582_v15 = vld [vmem:[#allocation2] sm:$0xff] }
 0x163   : > { %v1808_v21 = vpop.f32.mrf.mxu0 }
 0x164   : > { %v2514_v22 = vadd.f32 %v1808_v21, %v1725_v19  ;;  %v1964_v19 = vld [vmem:[%s2484_s12 + $0x28] sm:$0xff]  }
 0x165   : > { %v621_v24 = vpop.f32.mrf.mxu0  ;;  %1826 = vmatprep.subr.bf16.mxu1 %v1964_v19 }
 0x166   : > { %v2516_v25 = vadd.f32 %v1721_v20, %v621_v24  ;;  %704 = vmax.xlane.f32.xlu1 %v2514_v22  ;;  %v2598_v24 = vld [vmem:[#allocation2 + $0x8] sm:$0xff]  ;;  %1827 = vmatpush3.bf16.msra.mxu1 %v1964_v19 }
 0x167   : > { %v1809_v27 = vpop.f32.mrf.mxu0 }
 0x168   : > { %v2519_v29 = vadd.f32 %v1809_v27, %v1726_v23  ;;  %700 = vmax.xlane.f32.xlu0 %v2516_v25 }
 0x169   : > { %v624_v30 = vpop.f32.mrf.mxu0 }
 0x16a   : > { %v2522_v31 = vadd.f32 %v1722_v26, %v624_v30  ;;  %706 = vmax.xlane.f32.xlu1 %v2519_v29  ;;  %v1965_v30 = vld [vmem:[%s2484_s12 + $0x20] sm:$0xff]  }
 0x16b   : > { %v1812_v34 = vpop.f32.mrf.mxu0  ;;  %1828 = vmatprep.subr.bf16.mxu1 %v1965_v30 }
 0x16c   : > { %702 = vmax.xlane.f32.xlu0 %v2522_v31  ;;  %v2531_v46 = vadd.f32 %v1812_v34, %v1733_v37  ;;  %v2617_v34 = vld [vmem:[#allocation2 + $0x20] sm:$0xff]  ;;  %1829 = vmatpush3.bf16.msra.mxu1 %v1965_v30  ;;  %v2623_v37 = vld [vmem:[#allocation2 + $0x38] sm:$0xff] }
 0x16d   : > { %v637_v36 = vpop.f32.mrf.mxu0 }
 0x16e   : > { %v2526_v38 = vadd.f32 %v1729_v32, %v637_v36 }
 0x16f   : > { %v1813_v39 = vpop.f32.mrf.mxu0 }
 0x170   : > { %v2528_v41 = vadd.f32 %v1813_v39, %v1734_v35  ;;  %708 = vmax.xlane.f32.xlu0 %v2526_v38  ;;  %v1966_v39 = vld [vmem:[%s2484_s12 + $0x18] sm:$0xff]  }
 0x171   : > { %v640_v43 = vpop.f32.mrf.mxu0  ;;  %1830 = vmatprep.subr.bf16.mxu1 %v1966_v39 }
 0x172   : > { %714 = vmax.xlane.f32.xlu1 %v2528_v41  ;;  %v2534_v49 = vadd.f32 %v1730_v42, %v640_v43  ;;  %v2630_v43 = vld [vmem:[#allocation2 + $0x30] sm:$0xff]  ;;  %1831 = vmatpush3.bf16.msra.mxu1 %v1966_v39  ;;  %v2699_v39 = vld [vmem:[#allocation2 + $0x78] sm:$0xff] }
 0x173   : > { %v1816_v48 = vpop.f32.mrf.mxu0 }
 0x174   : > { %712 = vmax.xlane.f32.xlu0 %v2531_v46  ;;  %v2540_v56 = vadd.f32 %v1816_v48, %v1741_v50  ;;  %v2639_v48 = vld [vmem:[#allocation2 + $0x28] sm:$0xff]  ;;  %v1967_v50 = vld [vmem:[%s2484_s12 + $0x10] sm:$0xff]  }
 0x175   : > { %v653_v52 = vpop.f32.mrf.mxu0  ;;  %1832 = vmatprep.subr.bf16.mxu1 %v1967_v50 }
 0x176   : > { %v2537_v53 = vadd.f32 %v1737_v47, %v653_v52  ;;  %710 = vmax.xlane.f32.xlu1 %v2534_v49  ;;  %1833 = vmatpush3.bf16.msra.mxu1 %v1967_v50 }
 0x177   : > { %v1817_v54 = vpop.f32.mrf.mxu0 }
 0x178   : > { %v2542_v57 = vadd.f32 %v1817_v54, %v1742_v51  ;;  %716 = vmax.xlane.f32.xlu0 %v2537_v53 }
 0x179   : > { %v656_v59 = vpop.f32.mrf.mxu0 }
 0x17a   : > { %722 = vmax.xlane.f32.xlu1 %v2542_v57  ;;  %v2546_v63 = vadd.f32 %v1738_v58, %v656_v59 }
 0x17b   : > { %v1820_v62 = vpop.f32.mrf.mxu0 }
 0x17c   : > { %720 = vmax.xlane.f32.xlu0 %v2540_v56  ;;  %v2568_v6 = vadd.f32 %v1820_v62, %v1749_v0  ;;  %v1968_v62 = vld [vmem:[%s2484_s12 + $0x8] sm:$0xff]  }
 0x17d   : > { %v669_v3 = vpop.f32.mrf.mxu0  ;;  %1834 = vmatprep.subr.bf16.mxu1 %v1968_v62 }
 0x17e   : > { %v2565_v4 = vadd.f32 %v1745_v61, %v669_v3  ;;  %718 = vmax.xlane.f32.xlu1 %v2546_v63  ;;  %v2659_v61 = vld [vmem:[#allocation2 + $0x58] sm:$0xff]  ;;  %v2669_v3 = vld [vmem:[#allocation2 + $0x50] sm:$0xff]  ;;  %1835 = vmatpush3.bf16.msra.mxu1 %v1968_v62 }
 0x17f   : > { %v1821_v5 = vpop.f32.mrf.mxu0  ;;  %1836 = vmatprep.subr.bf16.mxu1 %v1969_v13 }
 0x180   : > { %v2570_v7 = vadd.f32 %v1821_v5, %v1750_v1  ;;  %724 = vmax.xlane.f32.xlu0 %v2565_v4 }
 0x181   : > { %v672_v9 = vpop.f32.mrf.mxu0 }
 0x182   : > { %730 = vmax.xlane.f32.xlu1 %v2570_v7  ;;  %v2574_v10 = vadd.f32 %v1746_v8, %v672_v9  ;;  %1837 = vmatpush3.bf16.msra.mxu1 %v1969_v13 }
 0x184   : > { %728 = vmax.xlane.f32.xlu0 %v2568_v6 }
 0x186   : > { %726 = vmax.xlane.f32.xlu1 %v2574_v10 }
 0x1ef   : > { %v705_v14 = vpop.xlane.xlu1 %704 }
 0x1f0   : > { %v2585_v16 = vmax.f32 %v2579_v12, %v705_v14 }
 0x1f1   : > { %v701_v17 = vpop.xlane.xlu0 %700 }
 0x1f2   : > { %v750_v20 = vsub.f32 %v2579_v12, %v2585_v16  ;;  %1320 = vst.msk [vmem:[#allocation2 + $0x10] sm:$0xff] %vm362_vm0, %v2585_v16  ;;  %v2595_v21 = vmax.f32 %v2582_v15, %v701_v17  ;;  %808 = vperm.xlu1 %1945, %v2585_v16  }
 0x1f3   : > { %v707_v23 = vpop.xlane.xlu1 %706 }
 0x1f4   : > { %1318 = vst.msk [vmem:[#allocation2] sm:$0xff] %vm362_vm0, %v2595_v21  ;;  %v2605_v27 = vmax.f32 %v2587_v18, %v707_v23  ;;  %798 = vperm.xlu0 %1944, %v2595_v21   ;;  %v2689_v23 = vld [vmem:[#allocation2 + $0x60] sm:$0xff] }
 0x1f5   : > { %v703_v28 = vpop.xlane.xlu0 %702 }
 0x1f6   : > { %1321 = vst.msk [vmem:[#allocation2 + $0x18] sm:$0xff] %vm362_vm0, %v2605_v27  ;;  %v2614_v33 = vmax.f32 %v2598_v24, %v703_v28  ;;  %813 = vperm.xlu1 %1945, %v2605_v27  }
 0x1f8   : > { %v749_v35 = vsub.f32 %v2598_v24, %v2614_v33  ;;  %1319 = vst.msk [vmem:[#allocation2 + $0x8] sm:$0xff] %vm362_vm0, %v2614_v33  ;;  %v2994_v24 = vsub.f32 %v2587_v18, %v2605_v27 }
 0x1f9   : > { %v709_v36 = vpop.xlane.xlu0 %708 }
 0x1fa   : > { %v2627_v40 = vmax.f32 %v2617_v34, %v709_v36  ;;  %803 = vperm.xlu1 %1945, %v2614_v33   ;;  %v770_v33 = vmul.f32 1.442695, %v2994_v24 }
 0x1fb   : > { %v715_v42 = vpop.xlane.xlu1 %714 }
 0x1fc   : > { %1322 = vst.msk [vmem:[#allocation2 + $0x20] sm:$0xff] %vm362_vm0, %v2627_v40  ;;  %v2637_v45 = vmax.f32 %v2623_v37, %v715_v42 }
 0x1fd   : > { %v713_v47 = vpop.xlane.xlu0 %712 }
 0x1fe   : > { %1325 = vst.msk [vmem:[#allocation2 + $0x38] sm:$0xff] %vm362_vm0, %v2637_v45  ;;  %v2647_v52 = vmax.f32 %v2630_v43, %v713_v47  ;;  %v2998_v18 = vsub.f32 %v2623_v37, %v2637_v45 }
 0x1ff   : > { %v711_v54 = vpop.xlane.xlu1 %710 }
 0x200   : > { %1324 = vst.msk [vmem:[#allocation2 + $0x30] sm:$0xff] %vm362_vm0, %v2647_v52  ;;  %v2656_v59 = vmax.f32 %v2639_v48, %v711_v54  ;;  %828 = vperm.xlu1 %1945, %v2647_v52   ;;  %v2709_v54 = vld [vmem:[#allocation2 + $0x70] sm:$0xff]  ;;  %v2995_v12 = vsub.f32 %v2630_v43, %v2647_v52  ;;  %v778_v27 = vmul.f32 1.442695, %v2998_v18  ;;  %v929_v18 = vld [vmem:[#allocation3 + $0x28] sm:$0xff] }
 0x201   : > { %v717_v60 = vpop.xlane.xlu0 %716 }
 0x202   : > { %1323 = vst.msk [vmem:[#allocation2 + $0x28] sm:$0xff] %vm362_vm0, %v2656_v59  ;;  %v2667_v1 = vmax.f32 %v2649_v55, %v717_v60  ;;  %v776_v16 = vmul.f32 1.442695, %v2995_v12 }
 0x203   : > { %v723_v2 = vpop.xlane.xlu1 %722 }
 0x204   : > { %1326 = vst.msk [vmem:[#allocation2 + $0x40] sm:$0xff] %vm362_vm0, %v2667_v1  ;;  %v2676_v8 = vmax.f32 %v2659_v61, %v723_v2  ;;  %818 = vperm.xlu1 %1945, %v2627_v40  }
 0x205   : > { %v721_v9 = vpop.xlane.xlu0 %720 }
 0x206   : > { %1329 = vst.msk [vmem:[#allocation2 + $0x58] sm:$0xff] %vm362_vm0, %v2676_v8  ;;  %v2687_v17 = vmax.f32 %v2669_v3, %v721_v9  ;;  %v2719_v9 = vld [vmem:[#allocation2 + $0x68] sm:$0xff] }
 0x207   : > { %v719_v19 = vpop.xlane.xlu1 %718 }
 0x208   : > { %1328 = vst.msk [vmem:[#allocation2 + $0x50] sm:$0xff] %vm362_vm0, %v2687_v17  ;;  %v2696_v30 = vmax.f32 %v2679_v11, %v719_v19  ;;  %823 = vperm.xlu1 %1945, %v2656_v59  }
 0x209   : > { %v725_v36 = vpop.xlane.xlu0 %724 }
 0x20a   : > { %1327 = vst.msk [vmem:[#allocation2 + $0x48] sm:$0xff] %vm362_vm0, %v2696_v30  ;;  %v2706_v47 = vmax.f32 %v2689_v23, %v725_v36  ;;  %843 = vperm.xlu0 %1944, %v2696_v30   ;;  %v3000_v52 = vsub.f32 %v2679_v11, %v2696_v30 }
 0x20b   : > { %v731_v50 = vpop.xlane.xlu1 %730 }
 0x20c   : > { %1330 = vst.msk [vmem:[#allocation2 + $0x60] sm:$0xff] %vm362_vm0, %v2706_v47  ;;  %v2716_v62 = vmax.f32 %v2699_v39, %v731_v50  ;;  %833 = vperm.xlu1 %1945, %v2637_v45   ;;  %v3001_v37 = vsub.f32 %v2689_v23, %v2706_v47 }
 0x20d   : > { %v729_v2 = vpop.xlane.xlu0 %728 }
 0x20e   : > { %1333 = vst.msk [vmem:[#allocation2 + $0x78] sm:$0xff] %vm362_vm0, %v2716_v62  ;;  %v2726_v19 = vmax.f32 %v2709_v54, %v729_v2  ;;  %853 = vperm.xlu0 %1944, %v2676_v8   ;;  %v788_v45 = vmul.f32 1.442695, %v3001_v37  ;;  %v934_v37 = vld [vmem:[#allocation3 + $0x50] sm:$0xff] }
 0x20f   : > { %v727_v36 = vpop.xlane.xlu1 %726 }
 0x210   : > { %1332 = vst.msk [vmem:[#allocation2 + $0x70] sm:$0xff] %vm362_vm0, %v2726_v19  ;;  %v2734_v14 = vmax.f32 %v2719_v9, %v727_v36  ;;  %838 = vperm.xlu1 %1945, %v2667_v1   ;;  %v3003_v11 = vsub.f32 %v2709_v54, %v2726_v19 }
 0x212   : > { %1331 = vst.msk [vmem:[#allocation2 + $0x68] sm:$0xff] %vm362_vm0, %v2734_v14  ;;  %863 = vperm.xlu0 %1944, %v2734_v14   ;;  %v792_v30 = vmul.f32 1.442695, %v3003_v11  ;;  %v3004_v23 = vsub.f32 %v2719_v9, %v2734_v14 }
 0x214   : > { %848 = vperm.xlu1 %1945, %v2687_v17  }
 0x216   : > { %873 = vperm.xlu0 %1944, %v2716_v62  }
 0x218   : > { %858 = vperm.xlu1 %1945, %v2706_v47   ;;  %v790_v47 = vmul.f32 1.442695, %v3004_v23 }
 0x21c   : > { %868 = vperm.xlu1 %1945, %v2726_v19  }
 0x26d   : > { %v809_v2 = vpop.permute.xlu1 %808 }
 0x26e   : > { %v878_v36 = vsub.f32 %v2514_v22, %v809_v2 }
 0x26f   : > { %v799_v50 = vpop.permute.xlu0 %798 }
 0x270   : > { %v896_v60 = vmul.f32 1.442695, %v878_v36  ;;  %v876_v13 = vsub.f32 %v2516_v25, %v799_v50 }
 0x271   : > { %v814_v42 = vpop.permute.xlu1 %813 }
 0x272   : > { %1970 = vpow2.f32 %v896_v60  ;;  %v892_v28 = vmul.f32 1.442695, %v876_v13  ;;  %v879_v51 = vsub.f32 %v2519_v29, %v814_v42 }
 0x274   : > { %1972 = vpow2.f32 %v892_v28  ;;  %v898_v5 = vmul.f32 1.442695, %v879_v51 }
 0x275   : > { %v804_v0 = vpop.permute.xlu1 %803 }
 0x276   : > { %v877_v58 = vsub.f32 %v2522_v31, %v804_v0  ;;  %1974 = vpow2.f32 %v898_v5 }
 0x278   : > { %v894_v32 = vmul.f32 1.442695, %v877_v58 }
 0x27a   : > { %1976 = vpow2.f32 %v894_v32 }
 0x27b   : > { %v829_v44 = vpop.permute.xlu1 %828 }
 0x27c   : > { %v882_v22 = vsub.f32 %v2531_v46, %v829_v44 }
 0x27e   : > { %v904_v2 = vmul.f32 1.442695, %v882_v22 }
 0x27f   : > { %v1971_v36 = vpop.eup %1970  ;;  %v819_v26 = vpop.permute.xlu1 %818 }
 0x280   : > { %1978 = vpow2.f32 %v904_v2  ;;  %v880_v25 = vsub.f32 %v2526_v38, %v819_v26  ;;  %960 = vadd.xlane.f32.xlu0 %v1971_v36 }
 0x281   : > { %v1973_v60 = vpop.eup %1972 }
 0x282   : > { %v900_v29 = vmul.f32 1.442695, %v880_v25  ;;  %956 = vadd.xlane.f32.xlu1 %v1973_v60 }
 0x283   : > { %v824_v51 = vpop.permute.xlu1 %823  ;;  %v1975_v0 = vpop.eup %1974 }
 0x284   : > { %1980 = vpow2.f32 %v900_v29  ;;  %v881_v31 = vsub.f32 %v2534_v49, %v824_v51  ;;  %v1134_v42 = vpack.c.bf16 %v1975_v0, %v1971_v36 }
 0x285   : > { %v844_v58 = vpop.permute.xlu0 %843 }
 0x286   : > { %v902_v32 = vmul.f32 1.442695, %v881_v31  ;;  %962 = vadd.xlane.f32.xlu1 %v1975_v0  ;;  %v885_v46 = vsub.f32 %v2546_v63, %v844_v58 }
 0x287   : > { %v1977_v5 = vpop.eup %1976  ;;  %v834_v44 = vpop.permute.xlu1 %833 }
 0x288   : > { %1982 = vpow2.f32 %v902_v32  ;;  %v883_v28 = vsub.f32 %v2528_v41, %v834_v44  ;;  %958 = vadd.xlane.f32.xlu0 %v1977_v5  ;;  %v1133_v38 = vpack.c.bf16 %v1977_v5, %v1973_v60  ;;  %v910_v50 = vmul.f32 1.442695, %v885_v46 }
 0x289   : > { %v854_v26 = vpop.permute.xlu0 %853 }
 0x28a   : > { %v906_v13 = vmul.f32 1.442695, %v883_v28  ;;  %1838 = vmatprep.mubr.bf16.mxu1 %v1133_v38  ;;  %v887_v49 = vsub.f32 %v2542_v57, %v854_v26 }
 0x28b   : > { %v839_v22 = vpop.permute.xlu1 %838  ;;  %1839 = vmatmul.mubr.bf16.vlgmr.msra.gmra.mxu1 %v1134_v42 }
 0x28c   : > { %1984 = vpow2.f32 %v906_v13  ;;  %v884_v2 = vsub.f32 %v2537_v53, %v839_v22  ;;  %v914_v41 = vmul.f32 1.442695, %v887_v49 }
 0x28d   : > { %v1979_v25 = vpop.eup %1978  ;;  %v864_v63 = vpop.permute.xlu0 %863  ;;  %1986 = vpow2.f32 %v910_v50 }
 0x28e   : > { %v908_v29 = vmul.f32 1.442695, %v884_v2  ;;  %968 = vadd.xlane.f32.xlu0 %v1979_v25  ;;  %v889_v60 = vsub.f32 %v2574_v10, %v864_v63 }
 0x28f   : > { %v849_v51 = vpop.permute.xlu1 %848 }
 0x290   : > { %1988 = vpow2.f32 %v908_v29  ;;  %v886_v36 = vsub.f32 %v2540_v56, %v849_v51  ;;  %v918_v58 = vmul.f32 1.442695, %v889_v60  ;;  %v766_v51 = vmul.f32 1.442695, %v749_v35 }
 0x291   : > { %v1981_v31 = vpop.eup %1980  ;;  %v874_v0 = vpop.permute.xlu0 %873  ;;  %1990 = vpow2.f32 %v914_v41 }
 0x292   : > { %v912_v57 = vmul.f32 1.442695, %v886_v36  ;;  %964 = vadd.xlane.f32.xlu0 %v1981_v31  ;;  %v891_v53 = vsub.f32 %v2570_v7, %v874_v0  ;;  %v768_v36 = vmul.f32 1.442695, %v750_v20 }
 0x293   : > { %v859_v32 = vpop.permute.xlu1 %858 }
 0x294   : > { %1992 = vpow2.f32 %v912_v57  ;;  %v888_v5 = vsub.f32 %v2565_v4, %v859_v32  ;;  %v922_v10 = vmul.f32 1.442695, %v891_v53  ;;  %v2993_v57 = vsub.f32 %v2617_v34, %v2627_v40 }
 0x295   : > { %v1983_v46 = vpop.eup %1982  ;;  %1994 = vpow2.f32 %v918_v58  ;;  %v2999_v40 = vsub.f32 %v2669_v3, %v2687_v17  ;;  %v3002_v3 = vsub.f32 %v2659_v61, %v2676_v8  ;;  %v3005_v8 = vsub.f32 %v2699_v39, %v2716_v62 }
 0x296   : > { %v916_v44 = vmul.f32 1.442695, %v888_v5  ;;  %v1135_v28 = vpack.c.bf16 %v1983_v46, %v1981_v31  ;;  %v2992_v31 = vsub.f32 %v2582_v15, %v2595_v21  ;;  %v772_v58 = vmul.f32 1.442695, %v2993_v57 }
 0x297   : > { %v869_v38 = vpop.permute.xlu1 %868  ;;  %v2996_v15 = vsub.f32 %v2639_v48, %v2656_v59  ;;  %v2997_v21 = vsub.f32 %v2649_v55, %v2667_v1  ;;  %v784_v43 = vmul.f32 1.442695, %v2999_v40  ;;  %v782_v55 = vmul.f32 1.442695, %v3000_v52 }
 0x298   : > { %1996 = vpow2.f32 %v916_v44  ;;  %v890_v56 = vsub.f32 %v2568_v6, %v869_v38  ;;  %1842 = vmatprep.mubr.bf16.mxu1 %v1135_v28  ;;  %v764_v0 = vmul.f32 1.442695, %v2992_v31  ;;  %v786_v17 = vmul.f32 1.442695, %v3002_v3  ;;  %v924_v38 = vld [vmem:[#allocation3] sm:$0xff] }
 0x299   : > { %v1985_v26 = vpop.eup %1984  ;;  %1998 = vpow2.f32 %v922_v10  ;;  %v774_v20 = vmul.f32 1.442695, %v2996_v15  ;;  %v780_v34 = vmul.f32 1.442695, %v2997_v21  ;;  %v926_v10 = vld [vmem:[#allocation3 + $0x10] sm:$0xff]  ;;  %v931_v15 = vld [vmem:[#allocation3 + $0x38] sm:$0xff] }
 0x29a   : > { %v920_v42 = vmul.f32 1.442695, %v890_v56  ;;  %970 = vadd.xlane.f32.xlu1 %v1985_v26  ;;  %v1136_v13 = vpack.c.bf16 %v1985_v26, %v1979_v25  ;;  %v1987_v7 = vpop.eup %1986 }
 0x29c   : > { %2000 = vpow2.f32 %v920_v42  ;;  %1843 = vmatmul.mubr.bf16.gmra.mxu1 %v1136_v13 }
 0x29d   : > { %v1989_v50 = vpop.eup %1988  ;;  %2002 = vpow2.f32 %v766_v51 }
 0x29e   : > { %966 = vadd.xlane.f32.xlu1 %v1983_v46  ;;  %v1137_v4 = vpack.c.bf16 %v1987_v7, %v1989_v50  ;;  %v1991_v49 = vpop.eup %1990  ;;  %2004 = vpow2.f32 %v768_v36  ;;  %v794_v46 = vmul.f32 1.442695, %v3005_v8 }
 0x29f   : > { %2006 = vpow2.f32 %v764_v0  ;;  %v928_v0 = vld [vmem:[#allocation3 + $0x20] sm:$0xff] }
 0x2a0   : > { %1846 = vmatprep.mubr.bf16.mxu1 %v1137_v4  ;;  %2008 = vpow2.f32 %v772_v58 }
 0x2a1   : > { %v1993_v22 = vpop.eup %1992  ;;  %2010 = vpow2.f32 %v770_v33 }
 0x2a2   : > { %976 = vadd.xlane.f32.xlu0 %v1993_v22  ;;  %978 = vadd.xlane.f32.xlu1 %v1991_v49  ;;  %v1138_v2 = vpack.c.bf16 %v1991_v49, %v1993_v22  ;;  %v1995_v63 = vpop.eup %1994  ;;  %2012 = vpow2.f32 %v776_v16  ;;  %v925_v49 = vld [vmem:[#allocation3 + $0x8] sm:$0xff] }
 0x2a3   : > { %2014 = vpow2.f32 %v774_v20 }
 0x2a4   : > { %1847 = vmatmul.mubr.bf16.gmra.mxu1 %v1138_v2  ;;  %2016 = vpow2.f32 %v780_v34 }
 0x2a5   : > { %v1997_v6 = vpop.eup %1996  ;;  %2018 = vpow2.f32 %v778_v27 }
 0x2a6   : > { %972 = vadd.xlane.f32.xlu0 %v1989_v50  ;;  %974 = vadd.xlane.f32.xlu1 %v1987_v7  ;;  %v1139_v29 = vpack.c.bf16 %v1995_v63, %v1997_v6  ;;  %v1999_v25 = vpop.eup %1998  ;;  %2020 = vpow2.f32 %v784_v43  ;;  %v927_v50 = vld [vmem:[#allocation3 + $0x18] sm:$0xff] }
 0x2a7   : > { %2022 = vpow2.f32 %v782_v55 }
 0x2a8   : > { %1850 = vmatprep.mubr.bf16.mxu1 %v1139_v29  ;;  %2024 = vpow2.f32 %v788_v45 }
 0x2a9   : > { %v2001_v41 = vpop.eup %2000  ;;  %2026 = vpow2.f32 %v786_v17 }
 0x2aa   : > { %980 = vadd.xlane.f32.xlu0 %v1997_v6  ;;  %986 = vadd.xlane.f32.xlu1 %v1999_v25  ;;  %v1140_v60 = vpack.c.bf16 %v1999_v25, %v2001_v41  ;;  %v2786_v35 = vpop.eup %2002  ;;  %2028 = vpow2.f32 %v792_v30  ;;  %v933_v30 = vld [vmem:[#allocation3 + $0x48] sm:$0xff] }
 0x2ab   : > { %v2005_v48 = vpop.eup %2004  ;;  %2030 = vpow2.f32 %v790_v47  ;;  %v941_v6 = vmul.f32 %v2786_v35, %v925_v49  ;;  %v938_v49 = vld [vmem:[#allocation3 + $0x70] sm:$0xff] }
 0x2ac   : > { %1851 = vmatmul.mubr.bf16.gmra.mxu1 %v1140_v60  ;;  %v2007_v59 = vpop.eup %2006  ;;  %2032 = vpow2.f32 %v794_v46  ;;  %v942_v56 = vmul.f32 %v2005_v48, %v926_v10  ;;  %v939_v10 = vld [vmem:[#allocation3 + $0x78] sm:$0xff] }
 0x2ad   : > { %v2801_v1 = vpop.eup %2008  ;;  %v940_v13 = vmul.f32 %v2007_v59, %v924_v38  ;;  %v936_v38 = vld [vmem:[#allocation3 + $0x60] sm:$0xff] }
 0x2ae   : > { %984 = vadd.xlane.f32.xlu0 %v2001_v41  ;;  %982 = vadd.xlane.f32.xlu1 %v1995_v63  ;;  %v2011_v53 = vpop.eup %2010  ;;  %v930_v41 = vld [vmem:[#allocation3 + $0x30] sm:$0xff]  ;;  %v944_v24 = vmul.f32 %v2801_v1, %v928_v0 }
 0x2af   : > { %v2013_v32 = vpop.eup %2012  ;;  %v943_v22 = vmul.f32 %v2011_v53, %v927_v50 }
 0x2b0   : > { %v2813_v5 = vpop.eup %2014  ;;  %v946_v36 = vmul.f32 %v2013_v32, %v930_v41 }
 0x2b1   : > { %v2816_v61 = vpop.eup %2016 }
 0x2b2   : > { %v2019_v54 = vpop.eup %2018 }
 0x2b3   : > { %v2822_v19 = vpop.eup %2020  ;;  %v947_v34 = vmul.f32 %v2019_v54, %v931_v15 }
 0x2b4   : > { %v2824_v14 = vpop.eup %2022  ;;  %v950_v3 = vmul.f32 %v2822_v19, %v934_v37 }
 0x2b5   : > { %v2828_v9 = vpop.eup %2024  ;;  %v949_v8 = vmul.f32 %v2824_v14, %v933_v30 }
 0x2b6   : > { %v2830_v44 = vpop.eup %2026 }
 0x2b7   : > { %v2834_v39 = vpop.eup %2028 }
 0x2b8   : > { %v2836_v62 = vpop.eup %2030 }
 0x2b9   : > { %v2840_v28 = vpop.eup %2032 }
 0x2bf   : > { %1044 = vperm.xlu1 %1945, %v2786_v35  }
 0x2c3   : > { %1049 = vperm.xlu1 %1945, %v2005_v48   ;;  %v945_v48 = vmul.f32 %v2813_v5, %v929_v18 }
 0x2c4   : > { %1039 = vperm.xlu0 %1944, %v2007_v59   ;;  %v935_v59 = vld [vmem:[#allocation3 + $0x58] sm:$0xff] }
 0x2c7   : > { %1059 = vperm.xlu1 %1945, %v2801_v1   ;;  %v951_v1 = vmul.f32 %v2830_v44, %v935_v59 }
 0x2c8   : > { %1054 = vperm.xlu0 %1944, %v2011_v53  }
 0x2cb   : > { %1069 = vperm.xlu1 %1945, %v2013_v32   ;;  %v932_v32 = vld [vmem:[#allocation3 + $0x40] sm:$0xff] }
 0x2cc   : > { %1064 = vperm.xlu0 %1944, %v2813_v5   ;;  %v948_v46 = vmul.f32 %v2816_v61, %v932_v32 }
 0x2cf   : > { %1079 = vperm.xlu1 %1945, %v2816_v61  }
 0x2d0   : > { %1074 = vperm.xlu0 %1944, %v2019_v54  }
 0x2d3   : > { %1089 = vperm.xlu1 %1945, %v2822_v19  }
 0x2d4   : > { %1084 = vperm.xlu0 %1944, %v2824_v14   ;;  %v952_v14 = vmul.f32 %v2828_v9, %v936_v38 }
 0x2d7   : > { %1099 = vperm.xlu1 %1945, %v2828_v9  }
 0x2d8   : > { %1094 = vperm.xlu0 %1944, %v2830_v44  }
 0x2db   : > { %1109 = vperm.xlu1 %1945, %v2834_v39  }
 0x2dc   : > { %1104 = vperm.xlu0 %1944, %v2836_v62  }
 0x2e0   : > { %1114 = vperm.xlu0 %1944, %v2840_v28  }
 0x309   : > { %v961_v26 = vpop.xlane.xlu0 %960 }
 0x30a   : > { %v990_v42 = vadd.f32 %v961_v26, %v942_v56 }
 0x30b   : > { %v957_v7 = vpop.xlane.xlu1 %956 }
 0x30c   : > { %1007 = vst.msk [vmem:[#allocation3 + $0x10] sm:$0xff] %vm362_vm0, %v990_v42  ;;  %v988_v4 = vadd.f32 %v957_v7, %v940_v13  ;;  %v955_v13 = vmul.f32 %v2840_v28, %v939_v10  ;;  %v954_v28 = vmul.f32 %v2834_v39, %v938_v49 }
 0x30e   : > { %1005 = vst.msk [vmem:[#allocation3] sm:$0xff] %vm362_vm0, %v988_v4  ;;  %v937_v4 = vld [vmem:[#allocation3 + $0x68] sm:$0xff] }
 0x30f   : > { %v963_v2 = vpop.xlane.xlu1 %962 }
 0x310   : > { %v991_v63 = vadd.f32 %v963_v2, %v943_v22 }
 0x311   : > { %v959_v29 = vpop.xlane.xlu0 %958 }
 0x312   : > { %1008 = vst.msk [vmem:[#allocation3 + $0x18] sm:$0xff] %vm362_vm0, %v991_v63  ;;  %v989_v25 = vadd.f32 %v959_v29, %v941_v6  ;;  %v953_v29 = vmul.f32 %v2836_v62, %v937_v4 }
 0x313   : > { %v1339_v60 = vld [vmem:[#allocation3 + $0x10] sm:$0xff] }
 0x314   : > { %1006 = vst.msk [vmem:[#allocation3 + $0x8] sm:$0xff] %vm362_vm0, %v989_v25  ;;  %2034 = vrcp.f32 %v1339_v60 }
 0x315   : > { %v1337_v51 = vld [vmem:[#allocation3] sm:$0xff] }
 0x316   : > { %2036 = vrcp.f32 %v1337_v51 }
 0x317   : > { %v969_v31 = vpop.xlane.xlu0 %968 }
 0x318   : > { %v994_v57 = vadd.f32 %v969_v31, %v946_v36 }
 0x319   : > { %v1340_v58 = vld [vmem:[#allocation3 + $0x18] sm:$0xff] }
 0x31a   : > { %1011 = vst.msk [vmem:[#allocation3 + $0x30] sm:$0xff] %vm362_vm0, %v994_v57  ;;  %2038 = vrcp.f32 %v1340_v58 }
 0x31b   : > { %v965_v33 = vpop.xlane.xlu0 %964  ;;  %v1338_v12 = vld [vmem:[#allocation3 + $0x8] sm:$0xff] }
 0x31c   : > { %v992_v16 = vadd.f32 %v965_v33, %v944_v24  ;;  %2040 = vrcp.f32 %v1338_v12 }
 0x31e   : > { %1009 = vst.msk [vmem:[#allocation3 + $0x20] sm:$0xff] %vm362_vm0, %v992_v16 }
 0x321   : > { %v2035_v20 = vpop.eup %2034  ;;  %v1343_v21 = vld [vmem:[#allocation3 + $0x30] sm:$0xff] }
 0x322   : > { %1397 = vperm.xlu1 %1945, %v2035_v20   ;;  %2042 = vrcp.f32 %v1343_v21 }
 0x323   : > { %v971_v35 = vpop.xlane.xlu1 %970  ;;  %v2037_v40 = vpop.eup %2036 }
 0x324   : > { %v995_v27 = vadd.f32 %v971_v35, %v947_v34 }
 0x325   : > { %v1341_v43 = vld [vmem:[#allocation3 + $0x20] sm:$0xff] }
 0x326   : > { %1012 = vst.msk [vmem:[#allocation3 + $0x38] sm:$0xff] %vm362_vm0, %v995_v27  ;;  %1387 = vperm.xlu1 %1945, %v2037_v40   ;;  %2044 = vrcp.f32 %v1341_v43 }
 0x327   : > { %v2039_v52 = vpop.eup %2038  ;;  %v967_v55 = vpop.xlane.xlu1 %966 }
 0x328   : > { %v993_v45 = vadd.f32 %v967_v55, %v945_v48  ;;  %1402 = vperm.xlu0 %1944, %v2039_v52  }
 0x329   : > { %v2041_v17 = vpop.eup %2040 }
 0x32a   : > { %1010 = vst.msk [vmem:[#allocation3 + $0x28] sm:$0xff] %vm362_vm0, %v993_v45 }
 0x32b   : > { %v979_v53 = vpop.xlane.xlu1 %978  ;;  %v977_v11 = vpop.xlane.xlu0 %976 }
 0x32c   : > { %v999_v23 = vadd.f32 %v979_v53, %v951_v1  ;;  %v998_v47 = vadd.f32 %v977_v11, %v950_v3  ;;  %1392 = vperm.xlu0 %1944, %v2041_v17  }
 0x32d   : > { %v1344_v5 = vld [vmem:[#allocation3 + $0x38] sm:$0xff] }
 0x32e   : > { %1016 = vst.msk [vmem:[#allocation3 + $0x58] sm:$0xff] %vm362_vm0, %v999_v23  ;;  %1015 = vst.msk [vmem:[#allocation3 + $0x50] sm:$0xff] %vm362_vm0, %v998_v47  ;;  %2046 = vrcp.f32 %v1344_v5 }
 0x32f   : > { %v2043_v54 = vpop.eup %2042  ;;  %v975_v19 = vpop.xlane.xlu1 %974 }
 0x330   : > { %v973_v44 = vpop.xlane.xlu0 %972  ;;  %v997_v56 = vadd.f32 %v975_v19, %v949_v8  ;;  %1417 = vperm.xlu1 %1945, %v2043_v54  }
 0x331   : > { %v996_v26 = vadd.f32 %v973_v44, %v948_v46  ;;  %v1342_v42 = vld [vmem:[#allocation3 + $0x28] sm:$0xff] }
 0x332   : > { %1014 = vst.msk [vmem:[#allocation3 + $0x48] sm:$0xff] %vm362_vm0, %v997_v56  ;;  %2048 = vrcp.f32 %v1342_v42 }
 0x333   : > { %1013 = vst.msk [vmem:[#allocation3 + $0x40] sm:$0xff] %vm362_vm0, %v996_v26  ;;  %v2045_v61 = vpop.eup %2044  ;;  %v987_v7 = vpop.xlane.xlu1 %986 }
 0x334   : > { %v981_v50 = vpop.xlane.xlu0 %980  ;;  %v1003_v22 = vadd.f32 %v987_v7, %v955_v13  ;;  %1407 = vperm.xlu1 %1945, %v2045_v61  }
 0x335   : > { %v1000_v2 = vadd.f32 %v981_v50, %v952_v14  ;;  %v1348_v63 = vld [vmem:[#allocation3 + $0x58] sm:$0xff]  ;;  %v1347_v6 = vld [vmem:[#allocation3 + $0x50] sm:$0xff] }
 0x336   : > { %1020 = vst.msk [vmem:[#allocation3 + $0x78] sm:$0xff] %vm362_vm0, %v1003_v22  ;;  %2050 = vrcp.f32 %v1348_v63 }
 0x337   : > { %1017 = vst.msk [vmem:[#allocation3 + $0x60] sm:$0xff] %vm362_vm0, %v1000_v2  ;;  %v983_v9 = vpop.xlane.xlu1 %982  ;;  %2052 = vrcp.f32 %v1347_v6 }
 0x338   : > { %v985_v25 = vpop.xlane.xlu0 %984  ;;  %v1001_v41 = vadd.f32 %v983_v9, %v953_v29 }
 0x339   : > { %v1002_v60 = vadd.f32 %v985_v25, %v954_v28  ;;  %v1346_v51 = vld [vmem:[#allocation3 + $0x48] sm:$0xff] }
 0x33a   : > { %v1345_v36 = vld [vmem:[#allocation3 + $0x40] sm:$0xff]  ;;  %1018 = vst.msk [vmem:[#allocation3 + $0x68] sm:$0xff] %vm362_vm0, %v1001_v41  ;;  %2054 = vrcp.f32 %v1346_v51 }
 0x33b   : > { %1019 = vst.msk [vmem:[#allocation3 + $0x70] sm:$0xff] %vm362_vm0, %v1002_v60  ;;  %v2047_v31 = vpop.eup %2046  ;;  %2056 = vrcp.f32 %v1345_v36  ;;  %v1045_v35 = vpop.permute.xlu1 %1044 }
 0x33c   : > { %1422 = vperm.xlu0 %1944, %v2047_v31   ;;  %v1118_v7 = vmul.f32 0.0, %v1045_v35 }
 0x33d   : > { %v1352_v24 = vld [vmem:[#allocation3 + $0x78] sm:$0xff] }
 0x33e   : > { %v1349_v0 = vld [vmem:[#allocation3 + $0x60] sm:$0xff] }
 0x33f   : > { %2058 = vrcp.f32 %v1349_v0  ;;  %v2049_v62 = vpop.eup %2048  ;;  %v1050_v18 = vpop.permute.xlu1 %1049 }
 0x340   : > { %1412 = vperm.xlu0 %1944, %v2049_v62   ;;  %v1040_v27 = vpop.permute.xlu0 %1039  ;;  %v1119_v47 = vmul.f32 0.0, %v1050_v18 }
 0x341   : > { %v1350_v39 = vld [vmem:[#allocation3 + $0x68] sm:$0xff]  ;;  %v1117_v54 = vmul.f32 0.0, %v1040_v27 }
 0x342   : > { %v1351_v57 = vld [vmem:[#allocation3 + $0x70] sm:$0xff]  ;;  %2060 = vrcp.f32 %v1350_v39 }
 0x343   : > { %v2051_v58 = vpop.eup %2050  ;;  %2062 = vrcp.f32 %v1351_v57  ;;  %v1060_v40 = vpop.permute.xlu1 %1059 }
 0x344   : > { %v2053_v33 = vpop.eup %2052  ;;  %1442 = vperm.xlu0 %1944, %v2051_v58   ;;  %2064 = vrcp.f32 %v1352_v24  ;;  %v1055_v43 = vpop.permute.xlu0 %1054  ;;  %v1121_v9 = vmul.f32 0.0, %v1060_v40 }
 0x345   : > { %1437 = vperm.xlu1 %1945, %v2053_v33   ;;  %v1120_v38 = vmul.f32 0.0, %v1055_v43 }
 0x347   : > { %v2055_v12 = vpop.eup %2054  ;;  %v1070_v48 = vpop.permute.xlu1 %1069 }
 0x348   : > { %v2057_v16 = vpop.eup %2056  ;;  %1432 = vperm.xlu0 %1944, %v2055_v12   ;;  %v1065_v52 = vpop.permute.xlu0 %1064  ;;  %v1123_v2 = vmul.f32 0.0, %v1070_v48 }
 0x349   : > { %1427 = vperm.xlu1 %1945, %v2057_v16   ;;  %v1122_v58 = vmul.f32 0.0, %v1065_v52 }
 0x34b   : > { %v2870_v55 = vpop.permute.xlu1 %1079  ;;  %v1840_v37 = vpop.f32.mrf.mxu1 }
 0x34c   : > { %v2059_v15 = vpop.eup %2058  ;;  %v1075_v59 = vpop.permute.xlu0 %1074  ;;  %v1288_v8 = vadd.f32 %v1840_v37, %v1119_v47  ;;  %v1125_v52 = vmul.f32 0.0, %v2870_v55 }
 0x34d   : > { %1447 = vperm.xlu1 %1945, %v2059_v15   ;;  %v1223_v3 = vpop.f32.mrf.mxu1  ;;  %v1124_v0 = vmul.f32 0.0, %v1075_v59 }
 0x34e   : > { %v1286_v56 = vadd.f32 %v1223_v3, %v1117_v54 }
 0x34f   : > { %v2061_v20 = vpop.eup %2060  ;;  %v1090_v45 = vpop.permute.xlu1 %1089 }
 0x350   : > { %v2063_v21 = vpop.eup %2062  ;;  %1452 = vperm.xlu0 %1944, %v2061_v20   ;;  %v2872_v1 = vpop.permute.xlu0 %1084 }
 0x351   : > { %1457 = vperm.xlu1 %1945, %v2063_v21   ;;  %v2065_v34 = vpop.eup %2064  ;;  %v1841_v11 = vpop.f32.mrf.mxu1  ;;  %v1127_v21 = vmul.f32 0.0, %v1090_v45  ;;  %v1126_v40 = vmul.f32 0.0, %v2872_v1 }
 0x352   : > { %v1289_v42 = vadd.f32 %v1841_v11, %v1120_v38 }
 0x353   : > { %v2874_v17 = vpop.permute.xlu1 %1099  ;;  %v1226_v30 = vpop.f32.mrf.mxu1 }
 0x354   : > { %1462 = vperm.xlu0 %1944, %v2065_v34   ;;  %v1095_v53 = vpop.permute.xlu0 %1094  ;;  %v1287_v4 = vadd.f32 %v1226_v30, %v1118_v7  ;;  %v1129_v47 = vmul.f32 0.0, %v2874_v17 }
 0x355   : > { %v1128_v15 = vmul.f32 0.0, %v1095_v53 }
 0x357   : > { %v2876_v32 = vpop.permute.xlu1 %1109 }
 0x358   : > { %v2878_v23 = vpop.permute.xlu0 %1104  ;;  %v1131_v54 = vmul.f32 0.0, %v2876_v32 }
 0x359   : > { %v1130_v55 = vmul.f32 0.0, %v2878_v23 }
 0x35c   : > { %v1844_v5 = vpop.f32.mrf.mxu1  ;;  %v2881_v44 = vpop.permute.xlu0 %1114 }
 0x35d   : > { %v1292_v6 = vadd.f32 %v1844_v5, %v1123_v2 }
 0x35e   : > { %v1239_v10 = vpop.f32.mrf.mxu1 }
 0x35f   : > { %v1290_v41 = vadd.f32 %v1239_v10, %v1121_v9 }
 0x360   : > { %v1845_v14 = vpop.f32.mrf.mxu1 }
 0x361   : > { %v1293_v62 = vadd.f32 %v1845_v14, %v1124_v0 }
 0x362   : > { %v1242_v49 = vpop.f32.mrf.mxu1 }
 0x363   : > { %v1291_v33 = vadd.f32 %v1242_v49, %v1122_v58 }
 0x364   : > { %v1848_v29 = vpop.f32.mrf.mxu1 }
 0x365   : > { %v1296_v35 = vadd.f32 %v1848_v29, %v1127_v21 }
 0x366   : > { %v1255_v60 = vpop.f32.mrf.mxu1 }
 0x367   : > { %v1294_v3 = vadd.f32 %v1255_v60, %v1125_v52 }
 0x368   : > { %v1849_v31 = vpop.f32.mrf.mxu1 }
 0x369   : > { %v1297_v34 = vadd.f32 %v1849_v31, %v1128_v15 }
 0x36a   : > { %v1258_v39 = vpop.f32.mrf.mxu1 }
 0x36b   : > { %v1295_v37 = vadd.f32 %v1258_v39, %v1126_v40 }
 0x36c   : > { %v1852_v12 = vpop.f32.mrf.mxu1 }
 0x36d   : > { %v1300_v38 = vadd.f32 %v1852_v12, %v1131_v54 }
 0x36e   : > { %v1271_v18 = vpop.f32.mrf.mxu1 }
 0x36f   : > { %v1298_v1 = vadd.f32 %v1271_v18, %v1129_v47 }
 0x370   : > { %v1853_v53 = vpop.f32.mrf.mxu1 }
 0x39d   : > { %v1398_v46 = vpop.permute.xlu1 %1397 }
 0x39e   : > { %v1467_v19 = vmul.f32 %v1398_v46, %v1288_v8  ;;  %v1274_v8 = vpop.f32.mrf.mxu1 }
 0x39f   : > { %v1299_v10 = vadd.f32 %v1274_v8, %v1130_v55 }
 0x3a0   : > { %1483 = vst [vmem:[%s2883_s30 + $0x10] sm:$0xff] %v1467_v19 }
 0x3a1   : > { %v1388_v26 = vpop.permute.xlu1 %1387 }
 0x3a2   : > { %v1465_v13 = vmul.f32 %v1388_v26, %v1286_v56  ;;  %v1132_v56 = vmul.f32 0.0, %v2881_v44 }
 0x3a3   : > { %v1403_v61 = vpop.permute.xlu0 %1402 }
 0x3a4   : > { %1481 = vst [vmem:[%s2883_s30] sm:$0xff] %v1465_v13  ;;  %v1468_v50 = vmul.f32 %v1403_v61, %v1289_v42  ;;  %v1301_v23 = vadd.f32 %v1853_v53, %v1132_v56 }
 0x3a6   : > { %1484 = vst [vmem:[%s2883_s30 + $0x18] sm:$0xff] %v1468_v50 }
 0x3a7   : > { %v1393_v22 = vpop.permute.xlu0 %1392 }
 0x3a8   : > { %v1466_v63 = vmul.f32 %v1393_v22, %v1287_v4 }
 0x3aa   : > { %1482 = vst [vmem:[%s2883_s30 + $0x8] sm:$0xff] %v1466_v63 }
 0x3ab   : > { %v1418_v28 = vpop.permute.xlu1 %1417 }
 0x3ac   : > { %v1471_v25 = vmul.f32 %v1418_v28, %v1292_v6 }
 0x3ae   : > { %1487 = vst [vmem:[%s2883_s30 + $0x30] sm:$0xff] %v1471_v25 }
 0x3af   : > { %v1408_v51 = vpop.permute.xlu1 %1407 }
 0x3b0   : > { %v1469_v36 = vmul.f32 %v1408_v51, %v1290_v41 }
 0x3b2   : > { %1485 = vst [vmem:[%s2883_s30 + $0x20] sm:$0xff] %v1469_v36 }
 0x3b7   : > { %v1423_v57 = vpop.permute.xlu0 %1422 }
 0x3b8   : > { %v1472_v24 = vmul.f32 %v1423_v57, %v1293_v62 }
 0x3ba   : > { %1488 = vst [vmem:[%s2883_s30 + $0x38] sm:$0xff] %v1472_v24 }
 0x3bb   : > { %v1413_v16 = vpop.permute.xlu0 %1412 }
 0x3bc   : > { %v1470_v20 = vmul.f32 %v1413_v16, %v1291_v33 }
 0x3be   : > { %1486 = vst [vmem:[%s2883_s30 + $0x28] sm:$0xff] %v1470_v20 }
 0x3bf   : > { %v1443_v27 = vpop.permute.xlu0 %1442 }
 0x3c0   : > { %v1476_v43 = vmul.f32 %v1443_v27, %v1297_v34  ;;  %v1438_v48 = vpop.permute.xlu1 %1437 }
 0x3c1   : > { %v1475_v59 = vmul.f32 %v1438_v48, %v1296_v35 }
 0x3c2   : > { %1492 = vst [vmem:[%s2883_s30 + $0x58] sm:$0xff] %v1476_v43 }
 0x3c3   : > { %1491 = vst [vmem:[%s2883_s30 + $0x50] sm:$0xff] %v1475_v59  ;;  %v1433_v45 = vpop.permute.xlu0 %1432 }
 0x3c4   : > { %v1474_v11 = vmul.f32 %v1433_v45, %v1295_v37  ;;  %v1428_v30 = vpop.permute.xlu1 %1427 }
 0x3c5   : > { %v1473_v5 = vmul.f32 %v1428_v30, %v1294_v3 }
 0x3c6   : > { %1490 = vst [vmem:[%s2883_s30 + $0x48] sm:$0xff] %v1474_v11 }
 0x3c7   : > { %1489 = vst [vmem:[%s2883_s30 + $0x40] sm:$0xff] %v1473_v5 }
 0x3c8   : > { %v1448_v46 = vpop.permute.xlu1 %1447 }
 0x3c9   : > { %v1477_v19 = vmul.f32 %v1448_v46, %v1298_v1 }
 0x3cb   : > { %1493 = vst [vmem:[%s2883_s30 + $0x60] sm:$0xff] %v1477_v19  ;;  %v1453_v17 = vpop.permute.xlu0 %1452 }
 0x3cc   : > { %v1478_v26 = vmul.f32 %v1453_v17, %v1299_v10  ;;  %v1458_v42 = vpop.permute.xlu1 %1457 }
 0x3cd   : > { %v1479_v13 = vmul.f32 %v1458_v42, %v1300_v38 }
 0x3ce   : > { %1494 = vst [vmem:[%s2883_s30 + $0x68] sm:$0xff] %v1478_v26 }
 0x3cf   : > { %1495 = vst [vmem:[%s2883_s30 + $0x70] sm:$0xff] %v1479_v13  ;;  %v1463_v14 = vpop.permute.xlu0 %1462 }
 0x3d0   : > { %v1480_v32 = vmul.f32 %v1463_v14, %v1301_v23 }
 0x3d2   : > { %1496 = vst [vmem:[%s2883_s30 + $0x78] sm:$0xff] %v1480_v32 }
 0x3d3   : > { %2189 = shalt.err (!%p2186_p6)
}
 0x3d4   : > { %s2190_s19 = scalar_lea.hbm %s2911_s13, 2048  ;;  %s2194_s10 = scalar_lea.hbm %s2966_s4, 4096 }
 0x3d5   : > { %p2191_p9 = scmp.ne.s32.totalorder %s2911_s13, %s2190_s19  ;;  %p2195_p13 = scmp.lt.s32.totalorder %s2911_s13, %s2966_s4 }
 0x3d6   : > { %p2196_p7 = scmp.lt.s32.totalorder %s2194_s10, %s2190_s19 }
 0x3d7   : > { %p2192_p4 = pnand %p2191_p9, %p2399_p12 }
 0x3d8   : > { %p2197_p2 = por %p2196_p7, %p2195_p13 }
 0x3d9   : > { %p2193_p3 = pneg %p2192_p4 }
 0x3db   : > { %p2198_p11 = pnand %p2197_p2, %p2193_p3 }
 0x3dd   : > { %2201 = shalt.err (!%p2198_p11)
}
 0x3de   : > { %s2276_s7 = smov 128   ;;  %s2277_s12 = smov 8  }
 0x3df   : > { %1864 = dma.vmem_to_hbm [thread:$0]  (%p2399_p12), %s2913_s1, 2048, %s2911_s13, %s1498_s8, %s2276_s7, %s2276_s7, %s2277_s12  }
 0x3e0 PF: > { %s1528_s23 = sand.u32 1, %s2244_s15   ;;  %p3006_p10 = scmp.ne.s32.totalorder %s2983_s6, 0 }
 0x3e1   : > { %p3007_p0 = scmp.ge.s32.totalorder %s2264_s20, 2  ;;  %s1529_s30 = scalar_lea.sflag [#allocation7], %s1528_s23 }
 0x3e3   : > { %p1881_p8 = pnand %p3007_p0, %p3006_p10 }
 0x3e5   : > { %p1882_p5 = pneg %p1881_p8 }
 0x3e7   : > { %2239 = dma.done.wait (%p1882_p5), %s1529_s30, 2048  }
 0x3e8   : > { %2241 = vsyncadd (%p1882_p5), %s1529_s30, 4294965248  ;;  %s24_s20 = sadd.s32 1, %s2264_s20   ;;  %s3008_s18 = sld [smem:[#allocation18_spill]] }
 0x3e9   : > { %p21_p1 = scmp.ge.s32.totalorder %s24_s20, 4   ;;  %s3009_s19 = sld [smem:[#allocation19_spill]] }
 0x3ea   : > { %s3010_s15 = smov %s2248_s16  ;;  %s3011_s16 = smov %s2252_s17 }
 0x3eb   : > { %s3012_s17 = smov %s2352_s26  ;;  %23 = sbr.rel (!%p21_p1) target bundleno = 12 (0xc), region = 118 }
 0x3f0   :  { %1534 = vsyncpa [#allocation6], 1 }
 0x3f1   :  { %1536 = vsyncpa [#allocation6 + $0x1], 1 }
 0x3f2   :  { %1537 = vsyncpa [#allocation9], 1 }
 0x3f3   :  { %1539 = vsyncpa [#allocation9 + $0x1], 1 }
 0x3f4   :  { %1540 = vsyncpa [#allocation12], 1 }
 0x3f5   :  { %1541 = vsyncpa [#allocation7], 1 }
 0x3f6   :  { %1543 = vsyncpa [#allocation7 + $0x1], 1 }

</bundles_post_ra>
